<compile_context>
chip_gen: v5e
topology: v5e:2x2
jax: 0.10.0
libtpu: 0.0.40
codegen_flags: <defaults>
</compile_context>

<pallas_src>
import jax
import jax.numpy as jnp
from jax.experimental import pallas as pl
from jax.experimental.pallas import tpu as pltpu

LANE = 128  # pad only the OUTPUT channel dim to a full vreg lane width


def conv_silu_kernel(x_ref, w_ref, b_ref, o_ref):
    """Fused 3x3 conv + x*sigmoid(x) for one batch-block.

    x_ref: (B, H+2, W+2, Ci)   spatially zero-padded input tile (VMEM), Ci = 32
    w_ref: (9, Ci, 128)        conv weights; tap index t = dh*3 + dw, cols = co
    b_ref: (1, 128)            zero-padded bias (VMEM)
    o_ref: (B, H, W, 128)      lane-dense output tile (VMEM)
    """
    B, H, W, Co = o_ref.shape
    Ci = x_ref.shape[3]
    M = B * H * W

    # 9 accumulating dots (unrolled) -- no im2col materialization, K = 32 per tap.
    acc = jnp.zeros((M, Co), dtype=jnp.float32)
    for dh in range(3):
        for dw in range(3):
            t = dh * 3 + dw
            lhs = x_ref[:, dh:dh + H, dw:dw + W, :].reshape(M, Ci)
            acc = acc + jnp.dot(lhs, w_ref[t],
                                preferred_element_type=jnp.float32)

    acc = acc + b_ref[0, :].astype(jnp.float32)[None, :]

    # v2 = sigmoid(v1); v3 = v1 * v2  (EUP sigmoid + VPU mul, fused in-register)
    out = acc * jax.nn.sigmoid(acc)
    o_ref[...] = out.reshape(B, H, W, Co).astype(o_ref.dtype)


def prepare_conv_params(w_oihw, bias):
    """One-time parameter preprocessing (hoisted out of the per-call path)."""
    co, ci, kh, kw = w_oihw.shape
    w_hwio = jnp.transpose(w_oihw, (2, 3, 1, 0))            # (KH, KW, Ci, Co)
    w_taps = w_hwio.reshape(kh * kw, ci, co)                # (9, Ci, Co), dh-major
    w_taps = jnp.pad(w_taps, ((0, 0), (0, 0), (0, LANE - co)))   # pad out-lanes only
    b_pad = jnp.pad(bias, (0, LANE - co)).reshape(1, LANE)
    return w_taps, b_pad, co


def _pick_batch_block(n):
    """Largest per-step batch block that still leaves >= 2 parallel grid steps."""
    if n <= 2:
        return 1
    for b in range(n // 2, 0, -1):
        if n % b == 0:
            return b
    return 1


def conv2d_silu(x_nchw, w_taps, b_pad, out_channels):
    """Forward pass equivalent to the PyTorch Model.forward (NCHW in / NCHW out).

    # TODO(synk): if the surrounding model can run NHWC end-to-end, accept NHWC
    # in/out and drop the two full-tensor transposes below.
    """
    x = jnp.transpose(x_nchw, (0, 2, 3, 1))                 # N, H, W, Cin
    N, H, W, Ci = x.shape

    # Spatial padding only (no channel padding of the input in HBM).
    x_pad = jnp.pad(x, ((0, 0), (1, 1), (1, 1), (0, 0)))

    B = _pick_batch_block(N)

    out_nhwc = pl.pallas_call(
        conv_silu_kernel,
        out_shape=jax.ShapeDtypeStruct((N, H, W, LANE), x.dtype),
        grid_spec=pltpu.PrefetchScalarGridSpec(
            num_scalar_prefetch=0,
            grid=(N // B,),
            in_specs=[
                pl.BlockSpec((B, H + 2, W + 2, Ci), lambda n: (n, 0, 0, 0)),
                pl.BlockSpec((9, Ci, LANE), lambda n: (0, 0, 0)),
                pl.BlockSpec((1, LANE), lambda n: (0, 0)),
            ],
            out_specs=pl.BlockSpec((B, H, W, LANE), lambda n: (n, 0, 0, 0)),
        ),
        compiler_params=pltpu.CompilerParams(
            dimension_semantics=("parallel",),
        ),
    )(x_pad, w_taps, b_pad)

    # Drop the output-channel padding and return NCHW (slice + transpose fuse).
    return jnp.transpose(out_nhwc[..., :out_channels], (0, 3, 1, 2))


def reference_conv_silu(x_nchw, w_oihw, bias):
    """Pure-JAX reference (NCHW conv, same padding) for correctness check."""
    v1 = jax.lax.conv_general_dilated(
        x_nchw, w_oihw,
        window_strides=(1, 1),
        padding=((1, 1), (1, 1)),
        dimension_numbers=("NCHW", "OIHW", "NCHW"),
    ) + bias.reshape(1, -1, 1, 1)
    return v1 * jax.nn.sigmoid(v1)


if __name__ == "__main__":
    key = jax.random.PRNGKey(0)
    kx, kw, kb = jax.random.split(key, 3)

    # Small shapes consistent with the module: Conv2d(32, 32, 3) forces C = 32.
    N, C, H, W = 2, 32, 16, 16
    x = jax.random.normal(kx, (N, C, H, W), dtype=jnp.float32)

    # Deterministic parameter init (PyTorch-like uniform(-k, k), k = 1/sqrt(fan_in)).
    fan_in = C * 3 * 3
    bound = 1.0 / (fan_in ** 0.5)
    w = jax.random.uniform(kw, (32, 32, 3, 3), jnp.float32, -bound, bound)  # OIHW
    b = jax.random.uniform(kb, (32,), jnp.float32, -bound, bound)

    # One-time weight/bias preprocessing (hoisted out of the forward path).
    w_taps, b_pad, co = prepare_conv_params(w, b)

    out = conv2d_silu(x, w_taps, b_pad, co)
    out = jax.block_until_ready(out)

    ref = jax.block_until_ready(reference_conv_silu(x, w, b))
    assert out.shape == (N, 32, H, W)
    assert jnp.allclose(out, ref, atol=1e-4, rtol=1e-4)

    print("KERNEL_OK")
</pallas_src>

<mosaic_0001>
module attributes {stable_mosaic.version = 11 : i64} {
  func.func @conv_silu_kernel(%arg0: i32, %arg1: memref<1x18x18x32xf32, #tpu.memory_space<vmem>>, %arg2: memref<9x32x128xf32, #tpu.memory_space<vmem>>, %arg3: memref<1x128xf32, #tpu.memory_space<vmem>>, %arg4: memref<1x16x16x128xf32, #tpu.memory_space<vmem>>) attributes {dimension_semantics = [#tpu.dimension_semantics<parallel>], iteration_bounds = array<i64: 2>, scalar_prefetch = 0 : i64, scratch_operands = 0 : i64, tpu.core_type = #tpu.core_type<tc>, window_params = [{transform_indices = @transform_0, window_bounds = array<i64: 1, 18, 18, 32>}, {pipeline_mode = #tpu.pipeline_mode<synchronous>, transform_indices = @transform_1, window_bounds = array<i64: 9, 32, 128>}, {pipeline_mode = #tpu.pipeline_mode<synchronous>, transform_indices = @transform_2, window_bounds = array<i64: 1, 128>}, {transform_indices = @transform_3, window_bounds = array<i64: 1, 16, 16, 128>}]} {
    %cst = arith.constant 0.000000e+00 : f32
    %0 = vector.broadcast %cst : f32 to vector<256x128xf32>
    %c0 = arith.constant 0 : index
    %c0_0 = arith.constant 0 : index
    %c0_1 = arith.constant 0 : index
    %c0_2 = arith.constant 0 : index
    %1 = vector.load %arg1[%c0, %c0_0, %c0_1, %c0_2] : memref<1x18x18x32xf32, #tpu.memory_space<vmem>>, vector<1x16x16x32xf32>
    %2 = vector.shape_cast %1 : vector<1x16x16x32xf32> to vector<256x32xf32>
    %c0_3 = arith.constant 0 : index
    %c0_4 = arith.constant 0 : index
    %c0_5 = arith.constant 0 : index
    %3 = vector.load %arg2[%c0_3, %c0_4, %c0_5] : memref<9x32x128xf32, #tpu.memory_space<vmem>>, vector<1x32x128xf32>
    %4 = vector.shape_cast %3 : vector<1x32x128xf32> to vector<32x128xf32>
    %cst_6 = arith.constant dense<0.000000e+00> : vector<256x128xf32>
    %5 = tpu.matmul %2, %4, %cst_6 {dimension_numbers = #tpu.dot_dimension_numbers<[1], [0], [0], [1], [0, 0, 1, 1], [], []>} : vector<256x32xf32>, vector<32x128xf32>, vector<256x128xf32> -> vector<256x128xf32>
    %6 = arith.addf %0, %5 : vector<256x128xf32>
    %c0_7 = arith.constant 0 : index
    %c0_8 = arith.constant 0 : index
    %c1 = arith.constant 1 : index
    %c0_9 = arith.constant 0 : index
    %7 = vector.load %arg1[%c0_7, %c0_8, %c1, %c0_9] : memref<1x18x18x32xf32, #tpu.memory_space<vmem>>, vector<1x16x16x32xf32>
    %8 = vector.shape_cast %7 : vector<1x16x16x32xf32> to vector<256x32xf32>
    %c1_10 = arith.constant 1 : index
    %c0_11 = arith.constant 0 : index
    %c0_12 = arith.constant 0 : index
    %9 = vector.load %arg2[%c1_10, %c0_11, %c0_12] : memref<9x32x128xf32, #tpu.memory_space<vmem>>, vector<1x32x128xf32>
    %10 = vector.shape_cast %9 : vector<1x32x128xf32> to vector<32x128xf32>
    %cst_13 = arith.constant dense<0.000000e+00> : vector<256x128xf32>
    %11 = tpu.matmul %8, %10, %cst_13 {dimension_numbers = #tpu.dot_dimension_numbers<[1], [0], [0], [1], [0, 0, 1, 1], [], []>} : vector<256x32xf32>, vector<32x128xf32>, vector<256x128xf32> -> vector<256x128xf32>
    %12 = arith.addf %6, %11 : vector<256x128xf32>
    %c0_14 = arith.constant 0 : index
    %c0_15 = arith.constant 0 : index
    %c2 = arith.constant 2 : index
    %c0_16 = arith.constant 0 : index
    %13 = vector.load %arg1[%c0_14, %c0_15, %c2, %c0_16] : memref<1x18x18x32xf32, #tpu.memory_space<vmem>>, vector<1x16x16x32xf32>
    %14 = vector.shape_cast %13 : vector<1x16x16x32xf32> to vector<256x32xf32>
    %c2_17 = arith.constant 2 : index
    %c0_18 = arith.constant 0 : index
    %c0_19 = arith.constant 0 : index
    %15 = vector.load %arg2[%c2_17, %c0_18, %c0_19] : memref<9x32x128xf32, #tpu.memory_space<vmem>>, vector<1x32x128xf32>
    %16 = vector.shape_cast %15 : vector<1x32x128xf32> to vector<32x128xf32>
    %cst_20 = arith.constant dense<0.000000e+00> : vector<256x128xf32>
    %17 = tpu.matmul %14, %16, %cst_20 {dimension_numbers = #tpu.dot_dimension_numbers<[1], [0], [0], [1], [0, 0, 1, 1], [], []>} : vector<256x32xf32>, vector<32x128xf32>, vector<256x128xf32> -> vector<256x128xf32>
    %18 = arith.addf %12, %17 : vector<256x128xf32>
    %c0_21 = arith.constant 0 : index
    %c1_22 = arith.constant 1 : index
    %c0_23 = arith.constant 0 : index
    %c0_24 = arith.constant 0 : index
    %19 = vector.load %arg1[%c0_21, %c1_22, %c0_23, %c0_24] : memref<1x18x18x32xf32, #tpu.memory_space<vmem>>, vector<1x16x16x32xf32>
    %20 = vector.shape_cast %19 : vector<1x16x16x32xf32> to vector<256x32xf32>
    %c3 = arith.constant 3 : index
    %c0_25 = arith.constant 0 : index
    %c0_26 = arith.constant 0 : index
    %21 = vector.load %arg2[%c3, %c0_25, %c0_26] : memref<9x32x128xf32, #tpu.memory_space<vmem>>, vector<1x32x128xf32>
    %22 = vector.shape_cast %21 : vector<1x32x128xf32> to vector<32x128xf32>
    %cst_27 = arith.constant dense<0.000000e+00> : vector<256x128xf32>
    %23 = tpu.matmul %20, %22, %cst_27 {dimension_numbers = #tpu.dot_dimension_numbers<[1], [0], [0], [1], [0, 0, 1, 1], [], []>} : vector<256x32xf32>, vector<32x128xf32>, vector<256x128xf32> -> vector<256x128xf32>
    %24 = arith.addf %18, %23 : vector<256x128xf32>
    %c0_28 = arith.constant 0 : index
    %c1_29 = arith.constant 1 : index
    %c1_30 = arith.constant 1 : index
    %c0_31 = arith.constant 0 : index
    %25 = vector.load %arg1[%c0_28, %c1_29, %c1_30, %c0_31] : memref<1x18x18x32xf32, #tpu.memory_space<vmem>>, vector<1x16x16x32xf32>
    %26 = vector.shape_cast %25 : vector<1x16x16x32xf32> to vector<256x32xf32>
    %c4 = arith.constant 4 : index
    %c0_32 = arith.constant 0 : index
    %c0_33 = arith.constant 0 : index
    %27 = vector.load %arg2[%c4, %c0_32, %c0_33] : memref<9x32x128xf32, #tpu.memory_space<vmem>>, vector<1x32x128xf32>
    %28 = vector.shape_cast %27 : vector<1x32x128xf32> to vector<32x128xf32>
    %cst_34 = arith.constant dense<0.000000e+00> : vector<256x128xf32>
    %29 = tpu.matmul %26, %28, %cst_34 {dimension_numbers = #tpu.dot_dimension_numbers<[1], [0], [0], [1], [0, 0, 1, 1], [], []>} : vector<256x32xf32>, vector<32x128xf32>, vector<256x128xf32> -> vector<256x128xf32>
    %30 = arith.addf %24, %29 : vector<256x128xf32>
    %c0_35 = arith.constant 0 : index
    %c1_36 = arith.constant 1 : index
    %c2_37 = arith.constant 2 : index
    %c0_38 = arith.constant 0 : index
    %31 = vector.load %arg1[%c0_35, %c1_36, %c2_37, %c0_38] : memref<1x18x18x32xf32, #tpu.memory_space<vmem>>, vector<1x16x16x32xf32>
    %32 = vector.shape_cast %31 : vector<1x16x16x32xf32> to vector<256x32xf32>
    %c5 = arith.constant 5 : index
    %c0_39 = arith.constant 0 : index
    %c0_40 = arith.constant 0 : index
    %33 = vector.load %arg2[%c5, %c0_39, %c0_40] : memref<9x32x128xf32, #tpu.memory_space<vmem>>, vector<1x32x128xf32>
    %34 = vector.shape_cast %33 : vector<1x32x128xf32> to vector<32x128xf32>
    %cst_41 = arith.constant dense<0.000000e+00> : vector<256x128xf32>
    %35 = tpu.matmul %32, %34, %cst_41 {dimension_numbers = #tpu.dot_dimension_numbers<[1], [0], [0], [1], [0, 0, 1, 1], [], []>} : vector<256x32xf32>, vector<32x128xf32>, vector<256x128xf32> -> vector<256x128xf32>
    %36 = arith.addf %30, %35 : vector<256x128xf32>
    %c0_42 = arith.constant 0 : index
    %c2_43 = arith.constant 2 : index
    %c0_44 = arith.constant 0 : index
    %c0_45 = arith.constant 0 : index
    %37 = vector.load %arg1[%c0_42, %c2_43, %c0_44, %c0_45] : memref<1x18x18x32xf32, #tpu.memory_space<vmem>>, vector<1x16x16x32xf32>
    %38 = vector.shape_cast %37 : vector<1x16x16x32xf32> to vector<256x32xf32>
    %c6 = arith.constant 6 : index
    %c0_46 = arith.constant 0 : index
    %c0_47 = arith.constant 0 : index
    %39 = vector.load %arg2[%c6, %c0_46, %c0_47] : memref<9x32x128xf32, #tpu.memory_space<vmem>>, vector<1x32x128xf32>
    %40 = vector.shape_cast %39 : vector<1x32x128xf32> to vector<32x128xf32>
    %cst_48 = arith.constant dense<0.000000e+00> : vector<256x128xf32>
    %41 = tpu.matmul %38, %40, %cst_48 {dimension_numbers = #tpu.dot_dimension_numbers<[1], [0], [0], [1], [0, 0, 1, 1], [], []>} : vector<256x32xf32>, vector<32x128xf32>, vector<256x128xf32> -> vector<256x128xf32>
    %42 = arith.addf %36, %41 : vector<256x128xf32>
    %c0_49 = arith.constant 0 : index
    %c2_50 = arith.constant 2 : index
    %c1_51 = arith.constant 1 : index
    %c0_52 = arith.constant 0 : index
    %43 = vector.load %arg1[%c0_49, %c2_50, %c1_51, %c0_52] : memref<1x18x18x32xf32, #tpu.memory_space<vmem>>, vector<1x16x16x32xf32>
    %44 = vector.shape_cast %43 : vector<1x16x16x32xf32> to vector<256x32xf32>
    %c7 = arith.constant 7 : index
    %c0_53 = arith.constant 0 : index
    %c0_54 = arith.constant 0 : index
    %45 = vector.load %arg2[%c7, %c0_53, %c0_54] : memref<9x32x128xf32, #tpu.memory_space<vmem>>, vector<1x32x128xf32>
    %46 = vector.shape_cast %45 : vector<1x32x128xf32> to vector<32x128xf32>
    %cst_55 = arith.constant dense<0.000000e+00> : vector<256x128xf32>
    %47 = tpu.matmul %44, %46, %cst_55 {dimension_numbers = #tpu.dot_dimension_numbers<[1], [0], [0], [1], [0, 0, 1, 1], [], []>} : vector<256x32xf32>, vector<32x128xf32>, vector<256x128xf32> -> vector<256x128xf32>
    %48 = arith.addf %42, %47 : vector<256x128xf32>
    %c0_56 = arith.constant 0 : index
    %c2_57 = arith.constant 2 : index
    %c2_58 = arith.constant 2 : index
    %c0_59 = arith.constant 0 : index
    %49 = vector.load %arg1[%c0_56, %c2_57, %c2_58, %c0_59] : memref<1x18x18x32xf32, #tpu.memory_space<vmem>>, vector<1x16x16x32xf32>
    %50 = vector.shape_cast %49 : vector<1x16x16x32xf32> to vector<256x32xf32>
    %c8 = arith.constant 8 : index
    %c0_60 = arith.constant 0 : index
    %c0_61 = arith.constant 0 : index
    %51 = vector.load %arg2[%c8, %c0_60, %c0_61] : memref<9x32x128xf32, #tpu.memory_space<vmem>>, vector<1x32x128xf32>
    %52 = vector.shape_cast %51 : vector<1x32x128xf32> to vector<32x128xf32>
    %cst_62 = arith.constant dense<0.000000e+00> : vector<256x128xf32>
    %53 = tpu.matmul %50, %52, %cst_62 {dimension_numbers = #tpu.dot_dimension_numbers<[1], [0], [0], [1], [0, 0, 1, 1], [], []>} : vector<256x32xf32>, vector<32x128xf32>, vector<256x128xf32> -> vector<256x128xf32>
    %54 = arith.addf %48, %53 : vector<256x128xf32>
    %c0_63 = arith.constant 0 : index
    %c0_64 = arith.constant 0 : index
    %55 = vector.load %arg3[%c0_63, %c0_64] : memref<1x128xf32, #tpu.memory_space<vmem>>, vector<1x128xf32>
    %56 = vector.shape_cast %55 : vector<1x128xf32> to vector<128xf32>
    %57 = vector.shape_cast %56 : vector<128xf32> to vector<1x128xf32>
    %58 = vector.broadcast %57 : vector<1x128xf32> to vector<256x128xf32>
    %59 = arith.addf %54, %58 : vector<256x128xf32>
    %60 = arith.negf %59 : vector<256x128xf32>
    %61 = math.exp %60 : vector<256x128xf32>
    %cst_65 = arith.constant 1.000000e+00 : f32
    %62 = vector.broadcast %cst_65 : f32 to vector<256x128xf32>
    %63 = arith.addf %62, %61 : vector<256x128xf32>
    %64 = arith.divf %62, %63 : vector<256x128xf32>
    %65 = arith.mulf %59, %64 : vector<256x128xf32>
    %66 = vector.shape_cast %65 : vector<256x128xf32> to vector<1x16x16x128xf32>
    %c0_66 = arith.constant 0 : index
    %c0_67 = arith.constant 0 : index
    %c0_68 = arith.constant 0 : index
    %c0_69 = arith.constant 0 : index
    %67 = vector.load %arg4[%c0_66, %c0_67, %c0_68, %c0_69] : memref<1x16x16x128xf32, #tpu.memory_space<vmem>>, vector<1x16x16x128xf32>
    tpu.vector_store %arg4[%c0_66, %c0_67, %c0_68, %c0_69], %66 {strides = array<i32>} : memref<1x16x16x128xf32, #tpu.memory_space<vmem>>, vector<1x16x16x128xf32>,
    return
  }
  func.func @transform_0(%arg0: i32) -> (i32, i32, i32, i32) {
    %c0_i32 = arith.constant 0 : i32
    %c0_i32_0 = arith.constant 0 : i32
    %c0_i32_1 = arith.constant 0 : i32
    %c0_i32_2 = arith.constant 0 : i32
    return %arg0, %c0_i32, %c0_i32_0, %c0_i32_1 : i32, i32, i32, i32
  }
  func.func @transform_1(%arg0: i32) -> (i32, i32, i32) {
    %c0_i32 = arith.constant 0 : i32
    %c0_i32_0 = arith.constant 0 : i32
    %c0_i32_1 = arith.constant 0 : i32
    %c0_i32_2 = arith.constant 0 : i32
    return %c0_i32, %c0_i32_0, %c0_i32_1 : i32, i32, i32
  }
  func.func @transform_2(%arg0: i32) -> (i32, i32) {
    %c0_i32 = arith.constant 0 : i32
    %c0_i32_0 = arith.constant 0 : i32
    %c0_i32_1 = arith.constant 0 : i32
    return %c0_i32, %c0_i32_0 : i32, i32
  }
  func.func @transform_3(%arg0: i32) -> (i32, i32, i32, i32) {
    %c0_i32 = arith.constant 0 : i32
    %c0_i32_0 = arith.constant 0 : i32
    %c0_i32_1 = arith.constant 0 : i32
    %c0_i32_2 = arith.constant 0 : i32
    return %arg0, %c0_i32, %c0_i32_0, %c0_i32_1 : i32, i32, i32, i32
  }
}

</mosaic_0001>

<bundles_post_ra>
// kernel: tpu_custom_call.1
= control target key start
LH: loop header
LB: loop body
LE: loop exit
PB: predicated region body
PF: predicated region fallthrough
CT: control target
= control target key end

     0   :  { %8 = vsyncpa [#allocation3], 0  ;;  %s5763_s0 = inlined_call_operand.vmem [shape: f32[2,18,18,32], index: 0, kind: input, shape index: {}]   ;;  %s5764_s1 = inlined_call_operand.vmem [shape: f32[9,32,128], index: 1, kind: input, shape index: {}]   ;;  %s5765_s2 = inlined_call_operand.vmem [shape: f32[1,128], index: 2, kind: input, shape index: {}]   ;;  %s5766_s3 = inlined_call_operand.hbm [shape: f32[2,16,16,128], index: 3, kind: output, shape index: {}]  }
   0x1   :  { %10 = vsyncpa [#allocation3 + $0x1], 0  ;;  %s4221_s12 = smov 0   ;;  %s4223_s13 = smov 0  }
   0x2   :  { %s4225_s14 = smov 0   ;;  %s4227_s15 = smov 0  }
   0x3 LB: > { %s4242_s16 = sadd.s32 4294967295, %s4197_s15   ;;  %s3395_s17 = sadd.s32 4294967294, %s4197_s15   ;;  %s4197_s15 = sphi %s4227_s15, %s5858_s15   ;;  %s4193_s14 = sphi %s4225_s14, %s5857_s14   ;;  %s4189_s13 = sphi %s4223_s13, %s5856_s13   ;;  %s4185_s12 = sphi %s4221_s12, %s5855_s12  }
   0x4   : > { %s4246_s18 = sadd.s32 1, %s4197_s15   ;;  %s91_s19 = sadd.s32 1, %s4193_s14 }
   0x5   : > { %s88_s20 = ssub.s32 %s4197_s15, %s4246_s18  ;;  %p101_p0 = scmp.ne.s32.totalorder %s4193_s14, %s4189_s13 }
   0x6   : > { %p89_p1 = scmp.eq.s32.totalorder %s88_s20, 0  ;;  %p102_p2 = scmp.eq.s32.totalorder %s4242_s16, 1 }
   0x7   : > { %p107_p3 = scmp.ne.s32.totalorder %s4189_s13, %s4185_s12  ;;  %p108_p4 = scmp.eq.s32.totalorder %s3395_s17, 1 }
   0x8   : > { %s4257_s21 = scalar_select %p89_p1, %s4193_s14, %s91_s19  }
   0x9   : > { %p4259_p5 = por %p102_p2, %p101_p0  ;;  %p4263_p6 = por %p108_p4, %p107_p3 }
   0xa   : > { %p3398_p7 = scmp.ge.s32.totalorder %s4197_s15, 1  ;;  %p140_p8 = scmp.lt.s32.totalorder %s4197_s15, 3 }
   0xc   : > { %p141_p9 = pnand %p3398_p7, %p140_p8 }
   0xe   : > { %144 = sbr.rel (%p141_p9) target bundleno = 770 (0x302), region = 32 }
  0x13   : > { %v3404_v0 = vld [vmem:[%s5764_s1 + $0x38] sm:$0xff]  ;;  %v3403_v1 = vld [vmem:[%s5764_s1 + $0x30] sm:$0xff]  ;;  %p164_p10 = scmp.lt.s32.totalorder %s4242_s16, 1  ;;  %v3402_v2 = vld [vmem:[%s5764_s1 + $0x28] sm:$0xff]  ;;  %vm242_vm0 = vcmask 261120   ;;  %s161_s7 = sand.u32 1, %s4189_s13  }
  0x14   : > { %3951 = vmatpush.msra.mxu1 %v3404_v0  ;;  %3952 = vmatpush.msra.mxu2 %v3404_v0  ;;  %v3401_v3 = vld [vmem:[%s5764_s1 + $0x20] sm:$0xff]  ;;  %v3472_v4 = vld [vmem:[%s5764_s1 + $0x58] sm:$0xff]  ;;  %v3471_v11 = vld [vmem:[%s5764_s1 + $0x50] sm:$0xff]  ;;  %s3399_s8 = sshll.u32 %s161_s7, 8  ;;  %s3950_s17 = sshll.u32 %s4242_s16, 8 }
  0x15   : > { %3953 = vmatpush.msra.mxu3 %v3404_v0  ;;  %s165_s30 = scalar_select %p164_p10, %s4242_s16, 1  ;;  %351 = vmatpush.msra.mxu0 %v3404_v0  ;;  %v204_v5 = vld [vmem:[%s5764_s1 + $0x18] sm:$0xff]  ;;  %v3539_v13 = vld [vmem:[%s5764_s1 + $0x70] sm:$0xff]  ;;  %v3470_v16 = vld [vmem:[%s5764_s1 + $0x48] sm:$0xff] }
  0x16   : > { %3954 = vmatpush.msra.mxu1 %v3403_v1  ;;  %3955 = vmatpush.msra.mxu2 %v3403_v1  ;;  %v3540_v9 = vld [vmem:[%s5764_s1 + $0x78] sm:$0xff]  ;;  %v203_v14 = vld [vmem:[%s5764_s1 + $0x10] sm:$0xff]  ;;  %v3538_v19 = vld [vmem:[%s5764_s1 + $0x68] sm:$0xff]  ;;  %s5263_s10 = scalar_lea.vmem [#allocation2], %s3399_s8  ;;  %s3329_s24 = scalar_lea.hbm %s5766_s3, %s3950_s17 }
  0x17   : > { %3956 = vmatpush.msra.mxu3 %v3403_v1  ;;  %s3963_s6 = smul.u32 432, %s165_s30  ;;  %352 = vmatpush.msra.mxu0 %v3403_v1  ;;  %v3608_v12 = vld [vmem:[%s5764_s1 + $0x98] sm:$0xff]  ;;  %v3607_v15 = vld [vmem:[%s5764_s1 + $0x90] sm:$0xff]  ;;  %v202_v20 = vld [vmem:[%s5764_s1 + $0x8] sm:$0xff]  ;;  %s3330_s16 = sshll.u32 %s5263_s10, 4  ;;  %s3331_s16 = int_to_ptr.vmem [resolvable:$true] %s3330_s16 }
  0x18   : > { %3957 = vmatpush.msra.mxu1 %v3402_v2  ;;  %3958 = vmatpush.msra.mxu2 %v3402_v2  ;;  %v3606_v23 = vld [vmem:[%s5764_s1 + $0x88] sm:$0xff]  ;;  %v3469_v27 = vld [vmem:[%s5764_s1 + $0x40] sm:$0xff]  ;;  %v3744_v39 = vld [vmem:[%s5764_s1 + $0xd8] sm:$0xff]  ;;  %s3332_s25 = sshll.u32 %s3329_s24, 4  ;;  %s3318_s26 = scalar_lea.sflag [#allocation3], %s161_s7  ;;  %s3333_s25 = int_to_ptr.hbm [resolvable:$true] %s3332_s25 }
  0x19   : > { %3959 = vmatpush.msra.mxu3 %v3402_v2  ;;  %s4286_s9 = scalar_lea.vmem %s5763_s0, %s3963_s6  ;;  %353 = vmatpush.msra.mxu0 %v3402_v2  ;;  %v3537_v29 = vld [vmem:[%s5764_s1 + $0x60] sm:$0xff]  ;;  %v3812_v41 = vld [vmem:[%s5764_s1 + $0xf8] sm:$0xff]  ;;  %s4149_s27 = sshra.s32 %s3333_s25, 4  ;;  %s4150_s27 = int_to_ptr.hbm [resolvable:$true] %s4149_s27 }
  0x1a   : > { %3960 = vmatpush.msra.mxu1 %v3401_v3  ;;  %3961 = vmatpush.msra.mxu2 %v3401_v3  ;;  %v4295_v6 = vld [vmem:[%s4286_s9 + $0x61] sm:$0xff]  ;;  %v4333_v17 = vld [vmem:[%s4286_s9 + $0x69] sm:$0xff]  ;;  %v4359_v24 = vld [vmem:[%s4286_s9 + $0x79] sm:$0xff]  ;;  %s4151_s28 = scalar_lea.hbm %s4150_s27, 256  ;;  %s4155_s4 = scalar_lea.hbm %s5766_s3, 512 }
  0x1b   : > { %v4298_v7 = vld [vmem:[%s4286_s9 + $0xc1] sm:$0xff]  ;;  %3413 = vmatmul.msk.f32.vlgmr.msra.gmra.mxu1 %vm242_vm0, %v4295_v6  ;;  %3962 = vmatpush.msra.mxu3 %v3401_v3  ;;  %v4336_v18 = vld [vmem:[%s4286_s9 + $0xc9] sm:$0xff]  ;;  %v4362_v25 = vld [vmem:[%s4286_s9 + $0xd9] sm:$0xff]  ;;  %p4152_p11 = scmp.ne.s32.totalorder %s4150_s27, %s4151_s28  ;;  %p4156_p0 = scmp.lt.s32.totalorder %s4150_s27, %s5766_s3 }
  0x1c   : > { %v4301_v8 = vld [vmem:[%s4286_s9 + $0x121] sm:$0xff]  ;;  %3421 = vmatmul.msk.f32.vlgmr.msra.gmra.mxu2 %vm242_vm0, %v4298_v7  ;;  %560 = vmatpush.msrb.mxu1 %v204_v5  ;;  %v4345_v21 = vld [vmem:[%s4286_s9 + $0x129] sm:$0xff]  ;;  %v4365_v26 = vld [vmem:[%s4286_s9 + $0x139] sm:$0xff]  ;;  %p4157_p1 = scmp.lt.s32.totalorder %s4155_s4, %s4151_s28 }
  0x1d   : > { %806 = vmatpush.msrb.mxu2 %v3472_v4  ;;  %v205_v10 = vld [vmem:[%s4286_s9 + $0x1] sm:$0xff]  ;;  %3429 = vmatmul.msk.f32.vlgmr.msra.gmra.mxu3 %vm242_vm0, %v4301_v8  ;;  %v206_v22 = vld [vmem:[%s4286_s9 + $0x9] sm:$0xff]  ;;  %v4375_v28 = vld [vmem:[%s4286_s9 + $0x19] sm:$0xff]  ;;  %p4153_p12 = pnand %p4152_p11, %p4259_p5 }
  0x1e   : > { %1085 = vmatpush.msrb.mxu3 %v3540_v9  ;;  %354 = vmatpush.msra.mxu0 %v3401_v3  ;;  %v201_v30 = vld [vmem:[%s5764_s1] sm:$0xff]  ;;  %v4408_v36 = vld [vmem:[%s4286_s9 + $0x91] sm:$0xff]  ;;  %v4460_v48 = vld [vmem:[%s4286_s9 + $0xa9] sm:$0xff]  ;;  %p4158_p2 = por %p4157_p1, %p4156_p0 }
  0x1f   : > { %3405 = vmatmul.msk.f32.vlgmr.msra.gmra.mxu0 %vm242_vm0, %v205_v10  ;;  %807 = vmatpush.msrb.mxu2 %v3471_v11  ;;  %v4388_v31 = vld [vmem:[%s4286_s9 + $0x81] sm:$0xff]  ;;  %v4411_v37 = vld [vmem:[%s4286_s9 + $0xf1] sm:$0xff]  ;;  %v4437_v43 = vld [vmem:[%s4286_s9 + $0x99] sm:$0xff]  ;;  %p4154_p13 = pneg %p4153_p12 }
  0x20   : > { %1363 = vmatpush.msrb.mxu0 %v3608_v12  ;;  %1086 = vmatpush.msrb.mxu3 %v3539_v13  ;;  %v4391_v32 = vld [vmem:[%s4286_s9 + $0xe1] sm:$0xff]  ;;  %v4414_v38 = vld [vmem:[%s4286_s9 + $0x151] sm:$0xff]  ;;  %v4440_v44 = vld [vmem:[%s4286_s9 + $0xf9] sm:$0xff] }
  0x21   : > { %561 = vmatpush.msrb.mxu1 %v203_v14  ;;  %808 = vmatpush.msrb.mxu2 %v3470_v16  ;;  %v4394_v33 = vld [vmem:[%s4286_s9 + $0x141] sm:$0xff]  ;;  %v4424_v40 = vld [vmem:[%s4286_s9 + $0x31] sm:$0xff]  ;;  %v4443_v45 = vld [vmem:[%s4286_s9 + $0x159] sm:$0xff]  ;;  %p4159_p3 = pnand %p4158_p2, %p4154_p13 }
  0x22   : > { %1364 = vmatpush.msrb.mxu0 %v3607_v15  ;;  %1087 = vmatpush.msrb.mxu3 %v3538_v19  ;;  %v208_v34 = vld [vmem:[%s4286_s9 + $0x21] sm:$0xff]  ;;  %v3676_v42 = vld [vmem:[%s5764_s1 + $0xb8] sm:$0xff]  ;;  %v4463_v49 = vld [vmem:[%s4286_s9 + $0x109] sm:$0xff] }
  0x23   : > { %3414 = vmatmul.msk.f32.gmra.mxu1 %vm242_vm0, %v4333_v17  ;;  %809 = vmatpush.msrb.mxu2 %v3469_v27  ;;  %v3605_v35 = vld [vmem:[%s5764_s1 + $0x80] sm:$0xff]  ;;  %v3880_v47 = vld [vmem:[%s5764_s1 + $0x118] sm:$0xff]  ;;  %v4466_v50 = vld [vmem:[%s4286_s9 + $0x169] sm:$0xff] }
  0x24   : > { %3422 = vmatmul.msk.f32.gmra.mxu2 %vm242_vm0, %v4336_v18  ;;  %562 = vmatpush.msrb.mxu1 %v202_v20  ;;  %v4450_v46 = vld [vmem:[%s4286_s9 + $0x39] sm:$0xff]  ;;  %v4473_v51 = vld [vmem:[%s4286_s9 + $0x49] sm:$0xff]  ;;  %v4480_v52 = vld [vmem:[%s4286_s9 + $0xb1] sm:$0xff] }
  0x25   : > { %3430 = vmatmul.msk.f32.gmra.mxu3 %vm242_vm0, %v4345_v21  ;;  %1365 = vmatpush.msrb.mxu0 %v3606_v23  ;;  %v4483_v53 = vld [vmem:[%s4286_s9 + $0x111] sm:$0xff]  ;;  %v169_v56 = vld [vmem:[%s4286_s9] sm:$0xff]  ;;  %v170_v59 = vld [vmem:[%s4286_s9 + $0x8] sm:$0xff] }
  0x26   : > { %1088 = vmatpush.msrb.mxu3 %v3537_v29  ;;  %563 = vmatpush.msrb.mxu1 %v201_v30  ;;  %v4486_v54 = vld [vmem:[%s4286_s9 + $0x171] sm:$0xff]  ;;  %v661_v57 = vld [vmem:[%s4286_s9 + $0x2] sm:$0xff]  ;;  %v4515_v62 = vld [vmem:[%s4286_s9 + $0x1a] sm:$0xff] }
  0x27   : > { %3406 = vmatmul.msk.f32.gmra.mxu0 %vm242_vm0, %v206_v22  ;;  %1920 = vmatpush.msra.mxu2 %v3744_v39  ;;  %v4493_v55 = vld [vmem:[%s4286_s9 + $0x51] sm:$0xff]  ;;  %v3506_v61 = vld [vmem:[%s4286_s9 + $0x20] sm:$0xff]  ;;  %v4544_v3 = vld [vmem:[%s4286_s9 + $0x48] sm:$0xff] }
  0x28   : > { %1366 = vmatpush.msrb.mxu0 %v3605_v35  ;;  %2198 = vmatpush.msra.mxu3 %v3812_v41  ;;  %v3505_v58 = vld [vmem:[%s4286_s9 + $0x18] sm:$0xff]  ;;  %v662_v60 = vld [vmem:[%s4286_s9 + $0xa] sm:$0xff]  ;;  %v4528_v0 = vld [vmem:[%s4286_s9 + $0x22] sm:$0xff] }
  0x29   : > { %1641 = vmatpush.msra.mxu1 %v3676_v42  ;;  %v4518_v63 = vld [vmem:[%s4286_s9 + $0x30] sm:$0xff]  ;;  %v4531_v1 = vld [vmem:[%s4286_s9 + $0x38] sm:$0xff]  ;;  %v4584_v14 = vld [vmem:[%s4286_s9 + $0x60] sm:$0xff] }
  0x2a   : > { %2476 = vmatpush.msra.mxu0 %v3880_v47  ;;  %v4541_v2 = vld [vmem:[%s4286_s9 + $0x32] sm:$0xff]  ;;  %v4564_v10 = vld [vmem:[%s4286_s9 + $0x3a] sm:$0xff]  ;;  %v4581_v13 = vld [vmem:[%s4286_s9 + $0x4a] sm:$0xff] }
  0x2b   : > { %3415 = vmatmul.msk.f32.gmra.mxu1 %vm242_vm0, %v4359_v24  ;;  %v3743_v4 = vld [vmem:[%s5764_s1 + $0xd0] sm:$0xff]  ;;  %v4598_v16 = vld [vmem:[%s4286_s9 + $0x68] sm:$0xff]  ;;  %v4614_v20 = vld [vmem:[%s4286_s9 + $0x78] sm:$0xff] }
  0x2c   : > { %3423 = vmatmul.msk.f32.gmra.mxu2 %vm242_vm0, %v4362_v25  ;;  %v3811_v5 = vld [vmem:[%s5764_s1 + $0xf0] sm:$0xff]  ;;  %5793 = vst [vmem:[#allocation5_spill] sm:$0xff] %v4598_v16  ;;  %v4636_v29 = vld [vmem:[%s4286_s9 + $0x80] sm:$0xff] }
  0x2d   : > { %3431 = vmatmul.msk.f32.gmra.mxu3 %vm242_vm0, %v4365_v26  ;;  %1921 = vmatpush.msra.mxu2 %v3743_v4  ;;  %v3675_v9 = vld [vmem:[%s5764_s1 + $0xb0] sm:$0xff]  ;;  %5794 = vst [vmem:[#allocation6_spill] sm:$0xff] %v4614_v20  ;;  %v4655_v39 = vld [vmem:[%s4286_s9 + $0x7a] sm:$0xff] }
  0x2e   : > { %2199 = vmatpush.msra.mxu3 %v3811_v5  ;;  %1642 = vmatpush.msra.mxu1 %v3675_v9  ;;  %v4567_v11 = vld [vmem:[%s4286_s9 + $0x50] sm:$0xff]  ;;  %5797 = vst [vmem:[#allocation9_spill] sm:$0xff] %v4636_v29  ;;  %v4702_v5 = vld [vmem:[%s4286_s9 + $0xa8] sm:$0xff] }
  0x2f   : > { %3407 = vmatmul.msk.f32.gmra.mxu0 %vm242_vm0, %v4375_v28  ;;  %v3879_v12 = vld [vmem:[%s5764_s1 + $0x110] sm:$0xff]  ;;  %5799 = vst [vmem:[#allocation11_spill] sm:$0xff] %v4655_v39 }
  0x30   : > { %2477 = vmatpush.msra.mxu0 %v3879_v12  ;;  %v4595_v15 = vld [vmem:[%s4286_s9 + $0x52] sm:$0xff]  ;;  %5806 = vst [vmem:[#allocation18_spill] sm:$0xff] %v4702_v5  ;;  %v3810_v12 = vld [vmem:[%s5764_s1 + $0xe8] sm:$0xff] }
  0x31   : > { %v4658_v41 = vld [vmem:[%s4286_s9 + $0x90] sm:$0xff]  ;;  %2200 = vmatpush.msra.mxu3 %v3810_v12  ;;  %v3878_v12 = vld [vmem:[%s5764_s1 + $0x108] sm:$0xff] }
  0x32   : > { %5800 = vst [vmem:[#allocation12_spill] sm:$0xff] %v4658_v41  ;;  %v4699_v4 = vld [vmem:[%s4286_s9 + $0x92] sm:$0xff]  ;;  %2478 = vmatpush.msra.mxu0 %v3878_v12 }
  0x33   : > { %3416 = vmatmul.msk.f32.gmra.mxu1 %vm242_vm0, %v4388_v31  ;;  %5805 = vst [vmem:[#allocation17_spill] sm:$0xff] %v4699_v4 }
  0x34   : > { %3424 = vmatmul.msk.f32.gmra.mxu2 %vm242_vm0, %v4391_v32 }
  0x35   : > { %3432 = vmatmul.msk.f32.gmra.mxu3 %vm242_vm0, %v4394_v33 }
  0x37   : > { %3408 = vmatmul.msk.f32.gmra.mxu0 %vm242_vm0, %v208_v34 }
  0x3b   : > { %3417 = vmatmul.msk.f32.gmra.mxu1 %vm242_vm0, %v4408_v36 }
  0x3c   : > { %3425 = vmatmul.msk.f32.gmra.mxu2 %vm242_vm0, %v4411_v37 }
  0x3d   : > { %3433 = vmatmul.msk.f32.gmra.mxu3 %vm242_vm0, %v4414_v38 }
  0x3f   : > { %3409 = vmatmul.msk.f32.gmra.mxu0 %vm242_vm0, %v4424_v40 }
  0x43   : > { %3418 = vmatmul.msk.f32.gmra.mxu1 %vm242_vm0, %v4437_v43 }
  0x44   : > { %3426 = vmatmul.msk.f32.gmra.mxu2 %vm242_vm0, %v4440_v44 }
  0x45   : > { %3434 = vmatmul.msk.f32.gmra.mxu3 %vm242_vm0, %v4443_v45 }
  0x47   : > { %3410 = vmatmul.msk.f32.gmra.mxu0 %vm242_vm0, %v4450_v46 }
  0x4b   : > { %3419 = vmatmul.msk.f32.gmra.mxu1 %vm242_vm0, %v4460_v48 }
  0x4c   : > { %3427 = vmatmul.msk.f32.gmra.mxu2 %vm242_vm0, %v4463_v49 }
  0x4d   : > { %3435 = vmatmul.msk.f32.gmra.mxu3 %vm242_vm0, %v4466_v50 }
  0x4f   : > { %3411 = vmatmul.msk.f32.gmra.mxu0 %vm242_vm0, %v4473_v51 }
  0x53   : > { %3420 = vmatmul.msk.f32.gmra.mxu1 %vm242_vm0, %v4480_v52 }
  0x54   : > { %3428 = vmatmul.msk.f32.gmra.mxu2 %vm242_vm0, %v4483_v53 }
  0x55   : > { %3436 = vmatmul.msk.f32.gmra.mxu3 %vm242_vm0, %v4486_v54 }
  0x57   : > { %3412 = vmatmul.msk.f32.gmra.mxu0 %vm242_vm0, %v4493_v55 }
  0x5b   : > { %3437 = vmatmul.msk.f32.vlgmr.msrb.gmra.mxu1 %vm242_vm0, %v169_v56 }
  0x5c   : > { %3473 = vmatmul.msk.f32.vlgmr.msrb.gmra.mxu2 %vm242_vm0, %v661_v57  ;;  %v4677_v57 = vld [vmem:[%s4286_s9 + $0x82] sm:$0xff] }
  0x5d   : > { %3541 = vmatmul.msk.f32.vlgmr.msrb.gmra.mxu3 %vm242_vm0, %v3505_v58  ;;  %5802 = vst [vmem:[#allocation14_spill] sm:$0xff] %v4677_v57 }
  0x5f   : > { %3609 = vmatmul.msk.f32.vlgmr.msrb.gmra.mxu0 %vm242_vm0, %v4375_v28  ;;  %v4633_v28 = vld [vmem:[%s4286_s9 + $0x6a] sm:$0xff] }
  0x60   : > { %5796 = vst [vmem:[#allocation8_spill] sm:$0xff] %v4633_v28 }
  0x63   : > { %3438 = vmatmul.msk.f32.gmra.mxu1 %vm242_vm0, %v170_v59 }
  0x64   : > { %3474 = vmatmul.msk.f32.gmra.mxu2 %vm242_vm0, %v662_v60 }
  0x65   : > { %3542 = vmatmul.msk.f32.gmra.mxu3 %vm242_vm0, %v3506_v61 }
  0x67   : > { %3610 = vmatmul.msk.f32.gmra.mxu0 %vm242_vm0, %v208_v34 }
  0x6b   : > { %3439 = vmatmul.msk.f32.gmra.mxu1 %vm242_vm0, %v3505_v58  ;;  %v4680_v58 = vld [vmem:[%s4286_s9 + $0x98] sm:$0xff] }
  0x6c   : > { %3475 = vmatmul.msk.f32.gmra.mxu2 %vm242_vm0, %v4515_v62  ;;  %5803 = vst [vmem:[#allocation15_spill] sm:$0xff] %v4680_v58 }
  0x6d   : > { %3543 = vmatmul.msk.f32.gmra.mxu3 %vm242_vm0, %v4518_v63 }
  0x6f   : > { %3611 = vmatmul.msk.f32.gmra.mxu0 %vm242_vm0, %v4424_v40 }
  0x73   : > { %3440 = vmatmul.msk.f32.gmra.mxu1 %vm242_vm0, %v3506_v61 }
  0x74   : > { %3476 = vmatmul.msk.f32.gmra.mxu2 %vm242_vm0, %v4528_v0 }
  0x75   : > { %3544 = vmatmul.msk.f32.gmra.mxu3 %vm242_vm0, %v4531_v1 }
  0x77   : > { %3612 = vmatmul.msk.f32.gmra.mxu0 %vm242_vm0, %v4450_v46 }
  0x7b   : > { %3441 = vmatmul.msk.f32.gmra.mxu1 %vm242_vm0, %v4518_v63 }
  0x7c   : > { %3477 = vmatmul.msk.f32.gmra.mxu2 %vm242_vm0, %v4541_v2 }
  0x7d   : > { %3545 = vmatmul.msk.f32.gmra.mxu3 %vm242_vm0, %v4544_v3 }
  0x7f   : > { %3613 = vmatmul.msk.f32.gmra.mxu0 %vm242_vm0, %v4473_v51 }
  0x83   : > { %3442 = vmatmul.msk.f32.gmra.mxu1 %vm242_vm0, %v4531_v1 }
  0x84   : > { %3478 = vmatmul.msk.f32.gmra.mxu2 %vm242_vm0, %v4564_v10 }
  0x85   : > { %3546 = vmatmul.msk.f32.gmra.mxu3 %vm242_vm0, %v4567_v11 }
  0x87   : > { %3614 = vmatmul.msk.f32.gmra.mxu0 %vm242_vm0, %v4493_v55 }
  0x8b   : > { %3443 = vmatmul.msk.f32.gmra.mxu1 %vm242_vm0, %v4544_v3 }
  0x8c   : > { %3479 = vmatmul.msk.f32.gmra.mxu2 %vm242_vm0, %v4581_v13 }
  0x8d   : > { %3547 = vmatmul.msk.f32.gmra.mxu3 %vm242_vm0, %v4584_v14 }
  0x8f   : > { %3615 = vmatmul.msk.f32.gmra.mxu0 %vm242_vm0, %v4295_v6  ;;  %v4611_v6 = vld [vmem:[%s4286_s9 + $0x62] sm:$0xff] }
  0x93   : > { %3444 = vmatmul.msk.f32.gmra.mxu1 %vm242_vm0, %v4567_v11 }
  0x94   : > { %3480 = vmatmul.msk.f32.gmra.mxu2 %vm242_vm0, %v4595_v15 }
  0x95   : > { %3548 = vmatmul.msk.f32.gmra.mxu3 %vm242_vm0, %v4598_v16 }
  0x97   : > { %3616 = vmatmul.msk.f32.gmra.mxu0 %vm242_vm0, %v4333_v17 }
  0x98   : > { %v4608_v19 = vpop.f32.mrf.mxu1 }
  0x9b   : > { %3445 = vmatmul.msk.f32.gmra.mxu1 %vm242_vm0, %v4584_v14 }
  0x9c   : > { %3481 = vmatmul.msk.f32.gmra.mxu2 %vm242_vm0, %v4611_v6  ;;  %v4620_v22 = vpop.f32.mrf.mxu0 }
  0x9d   : > { %3549 = vmatmul.msk.f32.gmra.mxu3 %vm242_vm0, %v4614_v20 }
  0x9f   : > { %v4624_v17 = vpop.f32.mrf.mxu2  ;;  %3617 = vmatmul.msk.f32.gmra.mxu0 %vm242_vm0, %v4359_v24 }
  0xa0   : > { %v4628_v23 = vpop.f32.mrf.mxu1  ;;  %v4630_v27 = vpop.f32.mrf.mxu3 }
  0xa1   : > { %5795 = vst [vmem:[#allocation7_spill] sm:$0xff] %v4630_v27  ;;  %v4733_v27 = vld [vmem:[%s4286_s9 + $0xb0] sm:$0xff] }
  0xa2   : > { %5809 = vst [vmem:[#allocation21_spill] sm:$0xff] %v4733_v27 }
  0xa3   : > { %3446 = vmatmul.msk.f32.gmra.mxu1 %vm242_vm0, %v4598_v16  ;;  %v4815_v16 = vld [vmem:[%s4286_s9 + $0xe0] sm:$0xff] }
  0xa4   : > { %3482 = vmatmul.msk.f32.gmra.mxu2 %vm242_vm0, %v4633_v28  ;;  %v4642_v30 = vpop.f32.mrf.mxu0 }
  0xa5   : > { %3550 = vmatmul.msk.f32.gmra.mxu3 %vm242_vm0, %v4636_v29 }
  0xa7   : > { %v4646_v24 = vpop.f32.mrf.mxu2  ;;  %3618 = vmatmul.msk.f32.gmra.mxu0 %vm242_vm0, %v4388_v31 }
  0xa8   : > { %v4650_v34 = vpop.f32.mrf.mxu1  ;;  %v4652_v35 = vpop.f32.mrf.mxu3 }
  0xa9   : > { %5798 = vst [vmem:[#allocation10_spill] sm:$0xff] %v4652_v35 }
  0xab   : > { %3447 = vmatmul.msk.f32.gmra.mxu1 %vm242_vm0, %v4614_v20 }
  0xac   : > { %3483 = vmatmul.msk.f32.gmra.mxu2 %vm242_vm0, %v4655_v39  ;;  %v4664_v42 = vpop.f32.mrf.mxu0 }
  0xad   : > { %3551 = vmatmul.msk.f32.gmra.mxu3 %vm242_vm0, %v4658_v41 }
  0xaf   : > { %v4668_v31 = vpop.f32.mrf.mxu2  ;;  %3619 = vmatmul.msk.f32.gmra.mxu0 %vm242_vm0, %v4408_v36 }
  0xb0   : > { %v4672_v47 = vpop.f32.mrf.mxu1  ;;  %v4674_v56 = vpop.f32.mrf.mxu3 }
  0xb1   : > { %5801 = vst [vmem:[#allocation13_spill] sm:$0xff] %v4674_v56  ;;  %v3674_v56 = vld [vmem:[%s5764_s1 + $0xa8] sm:$0xff] }
  0xb2   : > { %1643 = vmatpush.msra.mxu1 %v3674_v56 }
  0xb3   : > { %3448 = vmatmul.msk.f32.gmra.mxu1 %vm242_vm0, %v4636_v29  ;;  %v4780_v29 = vld [vmem:[%s4286_s9 + $0xc8] sm:$0xff] }
  0xb4   : > { %3484 = vmatmul.msk.f32.gmra.mxu2 %vm242_vm0, %v4677_v57  ;;  %v4686_v59 = vpop.f32.mrf.mxu0 }
  0xb5   : > { %3552 = vmatmul.msk.f32.gmra.mxu3 %vm242_vm0, %v4680_v58 }
  0xb7   : > { %v4690_v36 = vpop.f32.mrf.mxu2  ;;  %3620 = vmatmul.msk.f32.gmra.mxu0 %vm242_vm0, %v4437_v43  ;;  %v3742_v43 = vld [vmem:[%s5764_s1 + $0xc8] sm:$0xff] }
  0xb8   : > { %v4694_v60 = vpop.f32.mrf.mxu1  ;;  %v4696_v61 = vpop.f32.mrf.mxu3  ;;  %1922 = vmatpush.msra.mxu2 %v3742_v43 }
  0xb9   : > { %5804 = vst [vmem:[#allocation16_spill] sm:$0xff] %v4696_v61 }
  0xbb   : > { %3449 = vmatmul.msk.f32.gmra.mxu1 %vm242_vm0, %v4658_v41  ;;  %v4758_v41 = vld [vmem:[%s4286_s9 + $0xc0] sm:$0xff] }
  0xbc   : > { %3485 = vmatmul.msk.f32.gmra.mxu2 %vm242_vm0, %v4699_v4  ;;  %v4711_v9 = vpop.f32.mrf.mxu0  ;;  %v4730_v4 = vld [vmem:[%s4286_s9 + $0x9a] sm:$0xff]  ;;  %5813 = vst [vmem:[#allocation25_spill] sm:$0xff] %v4758_v41 }
  0xbd   : > { %3553 = vmatmul.msk.f32.gmra.mxu3 %vm242_vm0, %v4702_v5  ;;  %5808 = vst [vmem:[#allocation20_spill] sm:$0xff] %v4730_v4 }
  0xbf   : > { %v4718_v61 = vpop.f32.mrf.mxu2  ;;  %3621 = vmatmul.msk.f32.gmra.mxu0 %vm242_vm0, %v4460_v48 }
  0xc0   : > { %v4725_v35 = vpop.f32.mrf.mxu1  ;;  %v4727_v43 = vpop.f32.mrf.mxu3 }
  0xc1   : > { %5807 = vst [vmem:[#allocation19_spill] sm:$0xff] %v4727_v43 }
  0xc3   : > { %3450 = vmatmul.msk.f32.gmra.mxu1 %vm242_vm0, %v4680_v58  ;;  %v4755_v58 = vld [vmem:[%s4286_s9 + $0xaa] sm:$0xff] }
  0xc4   : > { %3486 = vmatmul.msk.f32.gmra.mxu2 %vm242_vm0, %v4730_v4  ;;  %v4739_v48 = vpop.f32.mrf.mxu0  ;;  %5812 = vst [vmem:[#allocation24_spill] sm:$0xff] %v4755_v58 }
  0xc5   : > { %3554 = vmatmul.msk.f32.gmra.mxu3 %vm242_vm0, %v4733_v27 }
  0xc7   : > { %v4746_v43 = vpop.f32.mrf.mxu2  ;;  %3622 = vmatmul.msk.f32.gmra.mxu0 %vm242_vm0, %v4480_v52 }
  0xc8   : > { %5810 = vst [vmem:[#allocation22_spill] sm:$0xff] %v4746_v43  ;;  %v4750_v56 = vpop.f32.mrf.mxu1  ;;  %v4752_v4 = vpop.f32.mrf.mxu3  ;;  %v4812_v43 = vld [vmem:[%s4286_s9 + $0xca] sm:$0xff] }
  0xc9   : > { %5811 = vst [vmem:[#allocation23_spill] sm:$0xff] %v4752_v4 }
  0xcb   : > { %3451 = vmatmul.msk.f32.gmra.mxu1 %vm242_vm0, %v4702_v5  ;;  %v4777_v5 = vld [vmem:[%s4286_s9 + $0xb2] sm:$0xff] }
  0xcc   : > { %3487 = vmatmul.msk.f32.gmra.mxu2 %vm242_vm0, %v4755_v58  ;;  %v4764_v57 = vpop.f32.mrf.mxu0  ;;  %5816 = vst [vmem:[#allocation28_spill] sm:$0xff] %v4777_v5 }
  0xcd   : > { %3555 = vmatmul.msk.f32.gmra.mxu3 %vm242_vm0, %v4758_v41 }
  0xcf   : > { %v4768_v52 = vpop.f32.mrf.mxu2  ;;  %3623 = vmatmul.msk.f32.gmra.mxu0 %vm242_vm0, %v4298_v7 }
  0xd0   : > { %5814 = vst [vmem:[#allocation26_spill] sm:$0xff] %v4768_v52  ;;  %v4772_v12 = vpop.f32.mrf.mxu1  ;;  %v4774_v4 = vpop.f32.mrf.mxu3  ;;  %v4797_v52 = vld [vmem:[%s4286_s9 + $0xc2] sm:$0xff] }
  0xd1   : > { %5815 = vst [vmem:[#allocation27_spill] sm:$0xff] %v4774_v4 }
  0xd2   : > { %5819 = vst [vmem:[#allocation31_spill] sm:$0xff] %v4797_v52 }
  0xd3   : > { %3452 = vmatmul.msk.f32.gmra.mxu1 %vm242_vm0, %v4733_v27  ;;  %v4800_v27 = vld [vmem:[%s4286_s9 + $0xd8] sm:$0xff] }
  0xd4   : > { %3488 = vmatmul.msk.f32.gmra.mxu2 %vm242_vm0, %v4777_v5  ;;  %v4786_v58 = vpop.f32.mrf.mxu0 }
  0xd5   : > { %3556 = vmatmul.msk.f32.gmra.mxu3 %vm242_vm0, %v4780_v29 }
  0xd7   : > { %v4790_v7 = vpop.f32.mrf.mxu2  ;;  %3624 = vmatmul.msk.f32.gmra.mxu0 %vm242_vm0, %v4336_v18 }
  0xd8   : > { %5817 = vst [vmem:[#allocation29_spill] sm:$0xff] %v4790_v7  ;;  %v4794_v4 = vpop.f32.mrf.mxu3  ;;  %v565_v39 = vpop.f32.mrf.mxu1 }
  0xd9   : > { %5818 = vst [vmem:[#allocation30_spill] sm:$0xff] %v4794_v4  ;;  %v566_v7 = vadd.f32 %v565_v39, %v4620_v22 }
  0xdb   : > { %3453 = vmatmul.msk.f32.gmra.mxu1 %vm242_vm0, %v4758_v41 }
  0xdc   : > { %3489 = vmatmul.msk.f32.gmra.mxu2 %vm242_vm0, %v4797_v52  ;;  %v1368_v5 = vpop.f32.mrf.mxu0 }
  0xdd   : > { %3557 = vmatmul.msk.f32.gmra.mxu3 %vm242_vm0, %v4800_v27 }
  0xdf   : > { %v811_v18 = vpop.f32.mrf.mxu2  ;;  %3625 = vmatmul.msk.f32.gmra.mxu0 %vm242_vm0, %v4362_v25 }
  0xe0   : > { %v907_v4 = vadd.f32 %v811_v18, %v566_v7  ;;  %v568_v20 = vpop.f32.mrf.mxu1  ;;  %v1090_v28 = vpop.f32.mrf.mxu3  ;;  %v4832_v18 = vld [vmem:[%s4286_s9 + $0xf0] sm:$0xff] }
  0xe1   : > { %v569_v25 = vadd.f32 %v568_v20, %v4642_v30 }
  0xe2   : > { %v1186_v41 = vadd.f32 %v1090_v28, %v907_v4  ;;  %v4829_v4 = vld [vmem:[%s4286_s9 + $0xda] sm:$0xff] }
  0xe3   : > { %3454 = vmatmul.msk.f32.gmra.mxu1 %vm242_vm0, %v4780_v29 }
  0xe4   : > { %v4817_v52 = vadd.f32 %v1368_v5, %v1186_v41  ;;  %3490 = vmatmul.msk.f32.gmra.mxu2 %vm242_vm0, %v4812_v43  ;;  %v1371_v22 = vpop.f32.mrf.mxu0 }
  0xe5   : > { %3558 = vmatmul.msk.f32.gmra.mxu3 %vm242_vm0, %v4815_v16 }
  0xe6   : > { %5820 = vst [vmem:[#allocation32_spill] sm:$0xff] %v4817_v52 }
  0xe7   : > { %v814_v39 = vpop.f32.mrf.mxu2  ;;  %3626 = vmatmul.msk.f32.gmra.mxu0 %vm242_vm0, %v4391_v32 }
  0xe8   : > { %v908_v7 = vadd.f32 %v814_v39, %v569_v25  ;;  %v571_v28 = vpop.f32.mrf.mxu1  ;;  %v1093_v41 = vpop.f32.mrf.mxu3 }
  0xe9   : > { %v572_v32 = vadd.f32 %v571_v28, %v4664_v42 }
  0xea   : > { %v1187_v5 = vadd.f32 %v1093_v41, %v908_v7  ;;  %v4846_v7 = vld [vmem:[%s4286_s9 + $0xe2] sm:$0xff] }
  0xeb   : > { %3455 = vmatmul.msk.f32.gmra.mxu1 %vm242_vm0, %v4800_v27 }
  0xec   : > { %v4834_v52 = vadd.f32 %v1371_v22, %v1187_v5  ;;  %3491 = vmatmul.msk.f32.gmra.mxu2 %vm242_vm0, %v4829_v4  ;;  %v1374_v20 = vpop.f32.mrf.mxu0  ;;  %v4849_v5 = vld [vmem:[%s4286_s9 + $0xf8] sm:$0xff] }
  0xed   : > { %3559 = vmatmul.msk.f32.gmra.mxu3 %vm242_vm0, %v4832_v18 }
  0xee   : > { %5821 = vst [vmem:[#allocation33_spill] sm:$0xff] %v4834_v52 }
  0xef   : > { %v817_v30 = vpop.f32.mrf.mxu2  ;;  %3627 = vmatmul.msk.f32.gmra.mxu0 %vm242_vm0, %v4411_v37 }
  0xf0   : > { %v909_v25 = vadd.f32 %v817_v30, %v572_v32  ;;  %v574_v39 = vpop.f32.mrf.mxu1  ;;  %v1096_v22 = vpop.f32.mrf.mxu3 }
  0xf1   : > { %v575_v37 = vadd.f32 %v574_v39, %v4686_v59  ;;  %v3741_v59 = vld [vmem:[%s5764_s1 + $0xc0] sm:$0xff] }
  0xf2   : > { %v1188_v41 = vadd.f32 %v1096_v22, %v909_v25  ;;  %v4863_v25 = vld [vmem:[%s4286_s9 + $0xf2] sm:$0xff]  ;;  %1923 = vmatpush.msra.mxu2 %v3741_v59  ;;  %v682_v59 = vld [vmem:[%s4286_s9 + $0xfa] sm:$0xff] }
  0xf3   : > { %3456 = vmatmul.msk.f32.gmra.mxu1 %vm242_vm0, %v4815_v16 }
  0xf4   : > { %v4851_v52 = vadd.f32 %v1374_v20, %v1188_v41  ;;  %3492 = vmatmul.msk.f32.gmra.mxu2 %vm242_vm0, %v4846_v7  ;;  %v1377_v42 = vpop.f32.mrf.mxu0  ;;  %v3525_v41 = vld [vmem:[%s4286_s9 + $0x108] sm:$0xff] }
  0xf5   : > { %3560 = vmatmul.msk.f32.gmra.mxu3 %vm242_vm0, %v4849_v5 }
  0xf6   : > { %5822 = vst [vmem:[#allocation34_spill] sm:$0xff] %v4851_v52 }
  0xf7   : > { %v820_v28 = vpop.f32.mrf.mxu2  ;;  %3628 = vmatmul.msk.f32.gmra.mxu0 %vm242_vm0, %v4440_v44 }
  0xf8   : > { %v910_v32 = vadd.f32 %v820_v28, %v575_v37  ;;  %v577_v30 = vpop.f32.mrf.mxu1  ;;  %v1099_v20 = vpop.f32.mrf.mxu3 }
  0xf9   : > { %v578_v39 = vadd.f32 %v577_v30, %v4711_v9  ;;  %v3526_v30 = vld [vmem:[%s4286_s9 + $0x110] sm:$0xff] }
  0xfa   : > { %v1189_v22 = vadd.f32 %v1099_v20, %v910_v32  ;;  %v3673_v32 = vld [vmem:[%s5764_s1 + $0xa0] sm:$0xff] }
  0xfb   : > { %3457 = vmatmul.msk.f32.gmra.mxu1 %vm242_vm0, %v4832_v18 }
  0xfc   : > { %v4866_v52 = vadd.f32 %v1377_v42, %v1189_v22  ;;  %3493 = vmatmul.msk.f32.gmra.mxu2 %vm242_vm0, %v4863_v25  ;;  %v1380_v44 = vpop.f32.mrf.mxu0  ;;  %v3809_v42 = vld [vmem:[%s5764_s1 + $0xe0] sm:$0xff]  ;;  %1644 = vmatpush.msra.mxu1 %v3673_v32 }
  0xfd   : > { %3561 = vmatmul.msk.f32.gmra.mxu3 %vm242_vm0, %v3525_v41 }
  0xfe   : > { %5823 = vst [vmem:[#allocation35_spill] sm:$0xff] %v4866_v52  ;;  %2201 = vmatpush.msra.mxu3 %v3809_v42  ;;  %v3877_v42 = vld [vmem:[%s5764_s1 + $0x100] sm:$0xff] }
  0xff   : > { %v823_v37 = vpop.f32.mrf.mxu2  ;;  %3629 = vmatmul.msk.f32.gmra.mxu0 %vm242_vm0, %v4463_v49 }
 0x100   : > { %v911_v28 = vadd.f32 %v823_v37, %v578_v39  ;;  %v580_v20 = vpop.f32.mrf.mxu1  ;;  %v1102_v22 = vpop.f32.mrf.mxu3  ;;  %2479 = vmatpush.msra.mxu0 %v3877_v42 }
 0x101   : > { %v581_v39 = vadd.f32 %v580_v20, %v4739_v48 }
 0x102   : > { %v1190_v9 = vadd.f32 %v1102_v22, %v911_v28  ;;  %v683_v22 = vld [vmem:[%s4286_s9 + $0x10a] sm:$0xff] }
 0x103   : > { %3458 = vmatmul.msk.f32.gmra.mxu1 %vm242_vm0, %v4849_v5 }
 0x104   : > { %v4887_v52 = vadd.f32 %v1380_v44, %v1190_v9  ;;  %3494 = vmatmul.msk.f32.gmra.mxu2 %vm242_vm0, %v682_v59  ;;  %v1383_v49 = vpop.f32.mrf.mxu0  ;;  %v3527_v9 = vld [vmem:[%s4286_s9 + $0x120] sm:$0xff] }
 0x105   : > { %3562 = vmatmul.msk.f32.gmra.mxu3 %vm242_vm0, %v3526_v30 }
 0x107   : > { %v826_v37 = vpop.f32.mrf.mxu2  ;;  %3630 = vmatmul.msk.f32.gmra.mxu0 %vm242_vm0, %v4483_v53 }
 0x108   : > { %v912_v28 = vadd.f32 %v826_v37, %v581_v39  ;;  %v583_v44 = vpop.f32.mrf.mxu1  ;;  %v1105_v32 = vpop.f32.mrf.mxu3 }
 0x109   : > { %v584_v42 = vadd.f32 %v583_v44, %v4764_v57 }
 0x10a   : > { %v1191_v59 = vadd.f32 %v1105_v32, %v912_v28  ;;  %v684_v32 = vld [vmem:[%s4286_s9 + $0x112] sm:$0xff] }
 0x10b   : > { %3459 = vmatmul.msk.f32.gmra.mxu1 %vm242_vm0, %v3525_v41 }
 0x10c   : > { %v4901_v48 = vadd.f32 %v1383_v49, %v1191_v59  ;;  %3495 = vmatmul.msk.f32.gmra.mxu2 %vm242_vm0, %v683_v22  ;;  %v1386_v20 = vpop.f32.mrf.mxu0  ;;  %v3528_v59 = vld [vmem:[%s4286_s9 + $0x128] sm:$0xff] }
 0x10d   : > { %3563 = vmatmul.msk.f32.gmra.mxu3 %vm242_vm0, %v3527_v9 }
 0x10f   : > { %v829_v39 = vpop.f32.mrf.mxu2  ;;  %3631 = vmatmul.msk.f32.gmra.mxu0 %vm242_vm0, %v4301_v8 }
 0x110   : > { %v913_v53 = vadd.f32 %v829_v39, %v584_v42  ;;  %v586_v37 = vpop.f32.mrf.mxu1  ;;  %v1108_v28 = vpop.f32.mrf.mxu3 }
 0x111   : > { %v587_v44 = vadd.f32 %v586_v37, %v4786_v58 }
 0x112   : > { %v1192_v49 = vadd.f32 %v1108_v28, %v913_v53  ;;  %v685_v53 = vld [vmem:[%s4286_s9 + $0x122] sm:$0xff]  ;;  %v3529_v28 = vld [vmem:[%s4286_s9 + $0x138] sm:$0xff] }
 0x113   : > { %3460 = vmatmul.msk.f32.gmra.mxu1 %vm242_vm0, %v3526_v30 }
 0x114   : > { %v4911_v41 = vadd.f32 %v1386_v20, %v1192_v49  ;;  %3496 = vmatmul.msk.f32.gmra.mxu2 %vm242_vm0, %v684_v32  ;;  %v1389_v57 = vpop.f32.mrf.mxu0 }
 0x115   : > { %3564 = vmatmul.msk.f32.gmra.mxu3 %vm242_vm0, %v3528_v59 }
 0x117   : > { %v832_v22 = vpop.f32.mrf.mxu2  ;;  %3632 = vmatmul.msk.f32.gmra.mxu0 %vm242_vm0, %v4345_v21 }
 0x118   : > { %v914_v8 = vadd.f32 %v832_v22, %v587_v44  ;;  %v589_v42 = vpop.f32.mrf.mxu1  ;;  %v1111_v39 = vpop.f32.mrf.mxu3  ;;  %v686_v22 = vld [vmem:[%s4286_s9 + $0x12a] sm:$0xff] }
 0x119   : > { %v590_v37 = vadd.f32 %v589_v42, %v4608_v19 }
 0x11a   : > { %v1193_v20 = vadd.f32 %v1111_v39, %v914_v8  ;;  %v3530_v8 = vld [vmem:[%s4286_s9 + $0x140] sm:$0xff] }
 0x11b   : > { %3461 = vmatmul.msk.f32.gmra.mxu1 %vm242_vm0, %v3527_v9 }
 0x11c   : > { %v4921_v30 = vadd.f32 %v1389_v57, %v1193_v20  ;;  %3497 = vmatmul.msk.f32.gmra.mxu2 %vm242_vm0, %v685_v53  ;;  %v1392_v58 = vpop.f32.mrf.mxu0 }
 0x11d   : > { %3565 = vmatmul.msk.f32.gmra.mxu3 %vm242_vm0, %v3529_v28 }
 0x11f   : > { %v835_v32 = vpop.f32.mrf.mxu2  ;;  %3633 = vmatmul.msk.f32.gmra.mxu0 %vm242_vm0, %v4365_v26 }
 0x120   : > { %v915_v21 = vadd.f32 %v835_v32, %v590_v37  ;;  %v592_v49 = vpop.f32.mrf.mxu1  ;;  %v1114_v44 = vpop.f32.mrf.mxu3  ;;  %v687_v37 = vld [vmem:[%s4286_s9 + $0x13a] sm:$0xff]  ;;  %v3531_v32 = vld [vmem:[%s4286_s9 + $0x150] sm:$0xff] }
 0x121   : > { %v593_v42 = vadd.f32 %v592_v49, %v4628_v23 }
 0x122   : > { %v1194_v57 = vadd.f32 %v1114_v44, %v915_v21 }
 0x123   : > { %3462 = vmatmul.msk.f32.gmra.mxu1 %vm242_vm0, %v3528_v59 }
 0x124   : > { %v4931_v9 = vadd.f32 %v1392_v58, %v1194_v57  ;;  %3498 = vmatmul.msk.f32.gmra.mxu2 %vm242_vm0, %v686_v22  ;;  %v1395_v19 = vpop.f32.mrf.mxu0  ;;  %v688_v57 = vld [vmem:[%s4286_s9 + $0x142] sm:$0xff] }
 0x125   : > { %3566 = vmatmul.msk.f32.gmra.mxu3 %vm242_vm0, %v3530_v8 }
 0x127   : > { %v838_v39 = vpop.f32.mrf.mxu2  ;;  %3634 = vmatmul.msk.f32.gmra.mxu0 %vm242_vm0, %v4394_v33 }
 0x128   : > { %v916_v26 = vadd.f32 %v838_v39, %v593_v42  ;;  %v595_v53 = vpop.f32.mrf.mxu1  ;;  %v1117_v20 = vpop.f32.mrf.mxu3  ;;  %v3532_v42 = vld [vmem:[%s4286_s9 + $0x158] sm:$0xff] }
 0x129   : > { %v596_v21 = vadd.f32 %v595_v53, %v4650_v34 }
 0x12a   : > { %v1195_v58 = vadd.f32 %v1117_v20, %v916_v26 }
 0x12b   : > { %3463 = vmatmul.msk.f32.gmra.mxu1 %vm242_vm0, %v3529_v28 }
 0x12c   : > { %v4941_v59 = vadd.f32 %v1395_v19, %v1195_v58  ;;  %3499 = vmatmul.msk.f32.gmra.mxu2 %vm242_vm0, %v687_v37  ;;  %v1398_v23 = vpop.f32.mrf.mxu0  ;;  %v689_v37 = vld [vmem:[%s4286_s9 + $0x152] sm:$0xff] }
 0x12d   : > { %3567 = vmatmul.msk.f32.gmra.mxu3 %vm242_vm0, %v3531_v32 }
 0x12f   : > { %v841_v49 = vpop.f32.mrf.mxu2  ;;  %3635 = vmatmul.msk.f32.gmra.mxu0 %vm242_vm0, %v4414_v38 }
 0x130   : > { %v917_v33 = vadd.f32 %v841_v49, %v596_v21  ;;  %v598_v44 = vpop.f32.mrf.mxu1  ;;  %v1120_v22 = vpop.f32.mrf.mxu3 }
 0x131   : > { %v599_v39 = vadd.f32 %v598_v44, %v4672_v47 }
 0x132   : > { %v1196_v19 = vadd.f32 %v1120_v22, %v917_v33  ;;  %v690_v22 = vld [vmem:[%s4286_s9 + $0x15a] sm:$0xff] }
 0x133   : > { %3464 = vmatmul.msk.f32.gmra.mxu1 %vm242_vm0, %v3530_v8 }
 0x134   : > { %v4951_v28 = vadd.f32 %v1398_v23, %v1196_v19  ;;  %3500 = vmatmul.msk.f32.gmra.mxu2 %vm242_vm0, %v688_v57  ;;  %v1401_v34 = vpop.f32.mrf.mxu0  ;;  %v3533_v23 = vld [vmem:[%s4286_s9 + $0x168] sm:$0xff]  ;;  %v3534_v19 = vld [vmem:[%s4286_s9 + $0x170] sm:$0xff] }
 0x135   : > { %3568 = vmatmul.msk.f32.gmra.mxu3 %vm242_vm0, %v3532_v42 }
 0x137   : > { %v844_v26 = vpop.f32.mrf.mxu2  ;;  %3636 = vmatmul.msk.f32.gmra.mxu0 %vm242_vm0, %v4443_v45 }
 0x138   : > { %v918_v38 = vadd.f32 %v844_v26, %v599_v39  ;;  %v601_v53 = vpop.f32.mrf.mxu1  ;;  %v1123_v20 = vpop.f32.mrf.mxu3 }
 0x139   : > { %v602_v21 = vadd.f32 %v601_v53, %v4694_v60  ;;  %v691_v53 = vld [vmem:[%s4286_s9 + $0x16a] sm:$0xff] }
 0x13a   : > { %v1197_v58 = vadd.f32 %v1123_v20, %v918_v38 }
 0x13b   : > { %3465 = vmatmul.msk.f32.gmra.mxu1 %vm242_vm0, %v3531_v32 }
 0x13c   : > { %v4961_v8 = vadd.f32 %v1401_v34, %v1197_v58  ;;  %3501 = vmatmul.msk.f32.gmra.mxu2 %vm242_vm0, %v689_v37  ;;  %v1404_v47 = vpop.f32.mrf.mxu0  ;;  %v3603_v58 = vld [vmem:[%s4286_s9 + $0x181] sm:$0xff] }
 0x13d   : > { %3569 = vmatmul.msk.f32.gmra.mxu3 %vm242_vm0, %v3533_v23 }
 0x13f   : > { %v847_v49 = vpop.f32.mrf.mxu2  ;;  %3637 = vmatmul.msk.f32.gmra.mxu0 %vm242_vm0, %v4466_v50 }
 0x140   : > { %v919_v45 = vadd.f32 %v847_v49, %v602_v21  ;;  %v604_v33 = vpop.f32.mrf.mxu1  ;;  %v1126_v44 = vpop.f32.mrf.mxu3 }
 0x141   : > { %v605_v34 = vadd.f32 %v604_v33, %v4725_v35  ;;  %v692_v33 = vld [vmem:[%s4286_s9 + $0x172] sm:$0xff] }
 0x142   : > { %v1198_v57 = vadd.f32 %v1126_v44, %v919_v45 }
 0x143   : > { %3466 = vmatmul.msk.f32.gmra.mxu1 %vm242_vm0, %v3532_v42  ;;  %v3535_v42 = vld [vmem:[%s4286_s9 + $0x180] sm:$0xff] }
 0x144   : > { %v4971_v32 = vadd.f32 %v1404_v47, %v1198_v57  ;;  %3502 = vmatmul.msk.f32.gmra.mxu2 %vm242_vm0, %v690_v22  ;;  %v1407_v60 = vpop.f32.mrf.mxu0  ;;  %v3536_v22 = vld [vmem:[%s4286_s9 + $0x188] sm:$0xff] }
 0x145   : > { %3570 = vmatmul.msk.f32.gmra.mxu3 %vm242_vm0, %v3534_v19 }
 0x147   : > { %v850_v50 = vpop.f32.mrf.mxu2  ;;  %3638 = vmatmul.msk.f32.gmra.mxu0 %vm242_vm0, %v4486_v54 }
 0x148   : > { %v920_v39 = vadd.f32 %v850_v50, %v605_v34  ;;  %v607_v26 = vpop.f32.mrf.mxu1  ;;  %v1129_v38 = vpop.f32.mrf.mxu3 }
 0x149   : > { %v608_v47 = vadd.f32 %v607_v26, %v4750_v56 }
 0x14a   : > { %v1199_v20 = vadd.f32 %v1129_v38, %v920_v39 }
 0x14b   : > { %3467 = vmatmul.msk.f32.gmra.mxu1 %vm242_vm0, %v3533_v23 }
 0x14c   : > { %v4981_v37 = vadd.f32 %v1407_v60, %v1199_v20  ;;  %3503 = vmatmul.msk.f32.gmra.mxu2 %vm242_vm0, %v691_v53  ;;  %v1410_v35 = vpop.f32.mrf.mxu0  ;;  %v3604_v60 = vld [vmem:[%s4286_s9 + $0x189] sm:$0xff] }
 0x14d   : > { %3571 = vmatmul.msk.f32.gmra.mxu3 %vm242_vm0, %v3535_v42 }
 0x14f   : > { %v853_v54 = vpop.f32.mrf.mxu2  ;;  %3639 = vmatmul.msk.f32.gmra.mxu0 %vm242_vm0, %v3603_v58 }
 0x150   : > { %v921_v21 = vadd.f32 %v853_v54, %v608_v47  ;;  %v610_v49 = vpop.f32.mrf.mxu1  ;;  %v1132_v45 = vpop.f32.mrf.mxu3 }
 0x151   : > { %v611_v56 = vadd.f32 %v610_v49, %v4772_v12 }
 0x152   : > { %v1200_v44 = vadd.f32 %v1132_v45, %v921_v21 }
 0x153   : > { %3468 = vmatmul.msk.f32.gmra.mxu1 %vm242_vm0, %v3534_v19 }
 0x154   : > { %v4991_v57 = vadd.f32 %v1410_v35, %v1200_v44  ;;  %3504 = vmatmul.msk.f32.gmra.mxu2 %vm242_vm0, %v692_v33  ;;  %v1413_v23 = vpop.f32.mrf.mxu0 }
 0x155   : > { %3572 = vmatmul.msk.f32.gmra.mxu3 %vm242_vm0, %v3536_v22 }
 0x157   : > { %v856_v34 = vpop.f32.mrf.mxu2  ;;  %3640 = vmatmul.msk.f32.gmra.mxu0 %vm242_vm0, %v3604_v60 }
 0x158   : > { %v922_v50 = vadd.f32 %v856_v34, %v611_v56  ;;  %v613_v39 = vpop.f32.mrf.mxu1  ;;  %v1135_v26 = vpop.f32.mrf.mxu3 }
 0x159   : > { %v614_v12 = vadd.f32 %v613_v39, %v4624_v17  ;;  %v3781_v39 = vld [vmem:[%s4286_s9 + $0x61] sm:$0xff] }
 0x15a   : > { %v1201_v38 = vadd.f32 %v1135_v26, %v922_v50 }
 0x15b   : > { %3677 = vmatmul.msk.f32.vlgmr.msra.gmra.mxu1 %vm242_vm0, %v4515_v62 }
 0x15c   : > { %v4999_v53 = vadd.f32 %v1413_v23, %v1201_v38  ;;  %3745 = vmatmul.msk.f32.vlgmr.msra.gmra.mxu2 %vm242_vm0, %v4518_v63  ;;  %v1416_v19 = vpop.f32.mrf.mxu0 }
 0x15d   : > { %3813 = vmatmul.msk.f32.vlgmr.msra.gmra.mxu3 %vm242_vm0, %v4424_v40 }
 0x15f   : > { %v859_v20 = vpop.f32.mrf.mxu2  ;;  %3881 = vmatmul.msk.f32.vlgmr.msra.gmra.mxu0 %vm242_vm0, %v4541_v2 }
 0x160   : > { %v923_v42 = vadd.f32 %v859_v20, %v614_v12  ;;  %v616_v35 = vpop.f32.mrf.mxu1  ;;  %v1138_v58 = vpop.f32.mrf.mxu3  ;;  %v3782_v20 = vld [vmem:[%s4286_s9 + $0x69] sm:$0xff] }
 0x161   : > { %v617_v63 = vadd.f32 %v616_v35, %v4646_v24 }
 0x162   : > { %v1202_v47 = vadd.f32 %v1138_v58, %v923_v42 }
 0x163   : > { %3678 = vmatmul.msk.f32.gmra.mxu1 %vm242_vm0, %v4528_v0 }
 0x164   : > { %v5010_v54 = vadd.f32 %v1416_v19, %v1202_v47  ;;  %3746 = vmatmul.msk.f32.gmra.mxu2 %vm242_vm0, %v4531_v1  ;;  %v1419_v62 = vpop.f32.mrf.mxu0 }
 0x165   : > { %3814 = vmatmul.msk.f32.gmra.mxu3 %vm242_vm0, %v4450_v46 }
 0x167   : > { %v862_v40 = vpop.f32.mrf.mxu2  ;;  %3882 = vmatmul.msk.f32.gmra.mxu0 %vm242_vm0, %v4564_v10 }
 0x168   : > { %v924_v17 = vadd.f32 %v862_v40, %v617_v63  ;;  %v619_v21 = vpop.f32.mrf.mxu1  ;;  %v1141_v49 = vpop.f32.mrf.mxu3 }
 0x169   : > { %v620_v1 = vadd.f32 %v619_v21, %v4668_v31  ;;  %v3783_v21 = vld [vmem:[%s4286_s9 + $0x79] sm:$0xff] }
 0x16a   : > { %v1203_v45 = vadd.f32 %v1141_v49, %v924_v17 }
 0x16b   : > { %3679 = vmatmul.msk.f32.gmra.mxu1 %vm242_vm0, %v4541_v2 }
 0x16c   : > { %v5021_v33 = vadd.f32 %v1419_v62, %v1203_v45  ;;  %3747 = vmatmul.msk.f32.gmra.mxu2 %vm242_vm0, %v4544_v3  ;;  %v1422_v0 = vpop.f32.mrf.mxu0  ;;  %v5826_v62 = vld [vmem:[#allocation8_spill] sm:$0xff] }
 0x16d   : > { %3815 = vmatmul.msk.f32.gmra.mxu3 %vm242_vm0, %v4473_v51 }
 0x16f   : > { %v865_v46 = vpop.f32.mrf.mxu2  ;;  %3883 = vmatmul.msk.f32.gmra.mxu0 %vm242_vm0, %v4581_v13 }
 0x170   : > { %v925_v24 = vadd.f32 %v865_v46, %v620_v1  ;;  %v622_v44 = vpop.f32.mrf.mxu1  ;;  %v1144_v22 = vpop.f32.mrf.mxu3 }
 0x171   : > { %v623_v51 = vadd.f32 %v622_v44, %v4690_v36  ;;  %v5829_v44 = vld [vmem:[#allocation11_spill] sm:$0xff] }
 0x172   : > { %v1204_v23 = vadd.f32 %v1144_v22, %v925_v24 }
 0x173   : > { %3680 = vmatmul.msk.f32.gmra.mxu1 %vm242_vm0, %v4564_v10 }
 0x174   : > { %v5032_v60 = vadd.f32 %v1422_v0, %v1204_v23  ;;  %3748 = vmatmul.msk.f32.gmra.mxu2 %vm242_vm0, %v4567_v11  ;;  %v1425_v2 = vpop.f32.mrf.mxu0  ;;  %v5828_v0 = vld [vmem:[#allocation26_spill] sm:$0xff] }
 0x175   : > { %3816 = vmatmul.msk.f32.gmra.mxu3 %vm242_vm0, %v4493_v55 }
 0x177   : > { %v868_v3 = vpop.f32.mrf.mxu2  ;;  %3884 = vmatmul.msk.f32.gmra.mxu0 %vm242_vm0, %v4595_v15 }
 0x178   : > { %v926_v31 = vadd.f32 %v868_v3, %v623_v51  ;;  %v625_v56 = vpop.f32.mrf.mxu1  ;;  %v1147_v34 = vpop.f32.mrf.mxu3  ;;  %v3784_v51 = vld [vmem:[%s4286_s9 + $0x81] sm:$0xff] }
 0x179   : > { %v626_v55 = vadd.f32 %v625_v56, %v4718_v61  ;;  %v5825_v61 = vld [vmem:[#allocation22_spill] sm:$0xff]  ;;  %v5831_v56 = vld [vmem:[#allocation29_spill] sm:$0xff] }
 0x17a   : > { %v1205_v50 = vadd.f32 %v1147_v34, %v926_v31 }
 0x17b   : > { %3681 = vmatmul.msk.f32.gmra.mxu1 %vm242_vm0, %v4581_v13  ;;  %v5824_v13 = vld [vmem:[#allocation5_spill] sm:$0xff] }
 0x17c   : > { %v5044_v10 = vadd.f32 %v1425_v2, %v1205_v50  ;;  %3749 = vmatmul.msk.f32.gmra.mxu2 %vm242_vm0, %v4584_v14  ;;  %v1428_v11 = vpop.f32.mrf.mxu0 }
 0x17d   : > { %3817 = vmatmul.msk.f32.gmra.mxu3 %vm242_vm0, %v3781_v39 }
 0x17f   : > { %v871_v36 = vpop.f32.mrf.mxu2  ;;  %3885 = vmatmul.msk.f32.gmra.mxu0 %vm242_vm0, %v4611_v6 }
 0x180   : > { %v927_v26 = vadd.f32 %v871_v36, %v626_v55  ;;  %v628_v38 = vpop.f32.mrf.mxu1  ;;  %v1150_v19 = vpop.f32.mrf.mxu3 }
 0x181   : > { %v629_v35 = vadd.f32 %v628_v38, %v5825_v61  ;;  %v3785_v38 = vld [vmem:[%s4286_s9 + $0x91] sm:$0xff] }
 0x182   : > { %v1206_v12 = vadd.f32 %v1150_v19, %v927_v26 }
 0x183   : > { %3682 = vmatmul.msk.f32.gmra.mxu1 %vm242_vm0, %v4595_v15  ;;  %v5827_v15 = vld [vmem:[#allocation6_spill] sm:$0xff] }
 0x184   : > { %v5055_v42 = vadd.f32 %v1428_v11, %v1206_v12  ;;  %3750 = vmatmul.msk.f32.gmra.mxu2 %vm242_vm0, %v5824_v13  ;;  %v1431_v14 = vpop.f32.mrf.mxu0  ;;  %v5832_v11 = vld [vmem:[#allocation14_spill] sm:$0xff]  ;;  %v5833_v12 = vld [vmem:[#allocation12_spill] sm:$0xff]  ;;  %v5834_v13 = vld [vmem:[#allocation7_spill] sm:$0xff] }
 0x185   : > { %3818 = vmatmul.msk.f32.gmra.mxu3 %vm242_vm0, %v3782_v20 }
 0x187   : > { %v874_v58 = vpop.f32.mrf.mxu2  ;;  %3886 = vmatmul.msk.f32.gmra.mxu0 %vm242_vm0, %v5826_v62 }
 0x188   : > { %v928_v47 = vadd.f32 %v874_v58, %v629_v35  ;;  %v631_v63 = vpop.f32.mrf.mxu1  ;;  %v1153_v40 = vpop.f32.mrf.mxu3  ;;  %v5835_v58 = vld [vmem:[#allocation17_spill] sm:$0xff] }
 0x189   : > { %v632_v1 = vadd.f32 %v631_v63, %v5828_v0 }
 0x18a   : > { %v1207_v17 = vadd.f32 %v1153_v40, %v928_v47  ;;  %v3786_v40 = vld [vmem:[%s4286_s9 + $0x99] sm:$0xff] }
 0x18b   : > { %3683 = vmatmul.msk.f32.gmra.mxu1 %vm242_vm0, %v4611_v6  ;;  %v5830_v6 = vld [vmem:[#allocation9_spill] sm:$0xff] }
 0x18c   : > { %v5066_v49 = vadd.f32 %v1431_v14, %v1207_v17  ;;  %3751 = vmatmul.msk.f32.gmra.mxu2 %vm242_vm0, %v5827_v15  ;;  %v1434_v45 = vpop.f32.mrf.mxu0 }
 0x18d   : > { %3819 = vmatmul.msk.f32.gmra.mxu3 %vm242_vm0, %v3783_v21  ;;  %v5836_v21 = vld [vmem:[#allocation15_spill] sm:$0xff] }
 0x18f   : > { %v877_v46 = vpop.f32.mrf.mxu2  ;;  %3887 = vmatmul.msk.f32.gmra.mxu0 %vm242_vm0, %v5829_v44 }
 0x190   : > { %v929_v24 = vadd.f32 %v877_v46, %v632_v1  ;;  %v634_v22 = vpop.f32.mrf.mxu1  ;;  %v1156_v23 = vpop.f32.mrf.mxu3 }
 0x191   : > { %v635_v34 = vadd.f32 %v634_v22, %v5831_v56  ;;  %v5840_v56 = vld [vmem:[#allocation13_spill] sm:$0xff] }
 0x192   : > { %v1208_v2 = vadd.f32 %v1156_v23, %v929_v24  ;;  %v5838_v24 = vld [vmem:[#allocation20_spill] sm:$0xff] }
 0x193   : > { %3684 = vmatmul.msk.f32.gmra.mxu1 %vm242_vm0, %v5826_v62 }
 0x194   : > { %v5077_v3 = vadd.f32 %v1434_v45, %v1208_v2  ;;  %3752 = vmatmul.msk.f32.gmra.mxu2 %vm242_vm0, %v5830_v6  ;;  %v1437_v31 = vpop.f32.mrf.mxu0  ;;  %v5837_v45 = vld [vmem:[#allocation10_spill] sm:$0xff] }
 0x195   : > { %3820 = vmatmul.msk.f32.gmra.mxu3 %vm242_vm0, %v3784_v51  ;;  %v3787_v2 = vld [vmem:[%s4286_s9 + $0xa9] sm:$0xff] }
 0x196   : > { %v5839_v6 = vld [vmem:[#allocation18_spill] sm:$0xff] }
 0x197   : > { %v880_v50 = vpop.f32.mrf.mxu2  ;;  %3888 = vmatmul.msk.f32.gmra.mxu0 %vm242_vm0, %v5832_v11 }
 0x198   : > { %v930_v39 = vadd.f32 %v880_v50, %v635_v34  ;;  %v637_v55 = vpop.f32.mrf.mxu1  ;;  %v1159_v36 = vpop.f32.mrf.mxu3 }
 0x199   : > { %v638_v14 = vadd.f32 %v637_v55, %v5834_v13 }
 0x19a   : > { %v1209_v26 = vadd.f32 %v1159_v36, %v930_v39 }
 0x19b   : > { %3685 = vmatmul.msk.f32.gmra.mxu1 %vm242_vm0, %v5829_v44 }
 0x19c   : > { %v5088_v19 = vadd.f32 %v1437_v31, %v1209_v26  ;;  %3753 = vmatmul.msk.f32.gmra.mxu2 %vm242_vm0, %v5833_v12  ;;  %v1440_v20 = vpop.f32.mrf.mxu0 }
 0x19d   : > { %3821 = vmatmul.msk.f32.gmra.mxu3 %vm242_vm0, %v3785_v38  ;;  %v3788_v38 = vld [vmem:[%s4286_s9 + $0xb1] sm:$0xff] }
 0x19f   : > { %v883_v61 = vpop.f32.mrf.mxu2  ;;  %3889 = vmatmul.msk.f32.gmra.mxu0 %vm242_vm0, %v5835_v58 }
 0x1a0   : > { %v931_v35 = vadd.f32 %v883_v61, %v638_v14  ;;  %v640_v47 = vpop.f32.mrf.mxu1  ;;  %v1162_v62 = vpop.f32.mrf.mxu3  ;;  %v5843_v14 = vld [vmem:[#allocation16_spill] sm:$0xff] }
 0x1a1   : > { %v641_v0 = vadd.f32 %v640_v47, %v5837_v45  ;;  %v5844_v47 = vld [vmem:[#allocation28_spill] sm:$0xff]  ;;  %v5845_v45 = vld [vmem:[#allocation25_spill] sm:$0xff] }
 0x1a2   : > { %v1210_v63 = vadd.f32 %v1162_v62, %v931_v35 }
 0x1a3   : > { %3686 = vmatmul.msk.f32.gmra.mxu1 %vm242_vm0, %v5832_v11  ;;  %v5841_v11 = vld [vmem:[#allocation24_spill] sm:$0xff] }
 0x1a4   : > { %v5099_v17 = vadd.f32 %v1440_v20, %v1210_v63  ;;  %3754 = vmatmul.msk.f32.gmra.mxu2 %vm242_vm0, %v5836_v21  ;;  %v1443_v15 = vpop.f32.mrf.mxu0  ;;  %v5842_v20 = vld [vmem:[#allocation21_spill] sm:$0xff] }
 0x1a5   : > { %3822 = vmatmul.msk.f32.gmra.mxu3 %vm242_vm0, %v3786_v40  ;;  %v3789_v21 = vld [vmem:[%s4286_s9 + $0xc1] sm:$0xff] }
 0x1a7   : > { %v886_v1 = vpop.f32.mrf.mxu2  ;;  %3890 = vmatmul.msk.f32.gmra.mxu0 %vm242_vm0, %v5838_v24 }
 0x1a8   : > { %v932_v46 = vadd.f32 %v886_v1, %v641_v0  ;;  %v643_v44 = vpop.f32.mrf.mxu1  ;;  %v1165_v22 = vpop.f32.mrf.mxu3  ;;  %v5846_v1 = vld [vmem:[#allocation19_spill] sm:$0xff] }
 0x1a9   : > { %v644_v34 = vadd.f32 %v643_v44, %v5840_v56 }
 0x1aa   : > { %v1211_v23 = vadd.f32 %v1165_v22, %v932_v46  ;;  %v5847_v22 = vld [vmem:[#allocation31_spill] sm:$0xff] }
 0x1ab   : > { %3687 = vmatmul.msk.f32.gmra.mxu1 %vm242_vm0, %v5835_v58 }
 0x1ac   : > { %v5110_v51 = vadd.f32 %v1443_v15, %v1211_v23  ;;  %3755 = vmatmul.msk.f32.gmra.mxu2 %vm242_vm0, %v5839_v6  ;;  %v1446_v31 = vpop.f32.mrf.mxu0 }
 0x1ad   : > { %3823 = vmatmul.msk.f32.gmra.mxu3 %vm242_vm0, %v3787_v2 }
 0x1af   : > { %v889_v50 = vpop.f32.mrf.mxu2  ;;  %3891 = vmatmul.msk.f32.gmra.mxu0 %vm242_vm0, %v5841_v11 }
 0x1b0   : > { %v933_v39 = vadd.f32 %v889_v50, %v644_v34  ;;  %v646_v55 = vpop.f32.mrf.mxu1  ;;  %v1168_v36 = vpop.f32.mrf.mxu3  ;;  %v5848_v50 = vld [vmem:[#allocation23_spill] sm:$0xff] }
 0x1b1   : > { %v647_v61 = vadd.f32 %v646_v55, %v5843_v14  ;;  %v5849_v14 = vld [vmem:[#allocation27_spill] sm:$0xff] }
 0x1b2   : > { %v1212_v26 = vadd.f32 %v1168_v36, %v933_v39 }
 0x1b3   : > { %3688 = vmatmul.msk.f32.gmra.mxu1 %vm242_vm0, %v5838_v24 }
 0x1b4   : > { %v5121_v12 = vadd.f32 %v1446_v31, %v1212_v26  ;;  %3756 = vmatmul.msk.f32.gmra.mxu2 %vm242_vm0, %v5842_v20  ;;  %v1449_v13 = vpop.f32.mrf.mxu0  ;;  %v3790_v31 = vld [vmem:[%s4286_s9 + $0xc9] sm:$0xff]  ;;  %v3791_v20 = vld [vmem:[%s4286_s9 + $0xd9] sm:$0xff] }
 0x1b5   : > { %3824 = vmatmul.msk.f32.gmra.mxu3 %vm242_vm0, %v3788_v38 }
 0x1b7   : > { %v892_v35 = vpop.f32.mrf.mxu2  ;;  %3892 = vmatmul.msk.f32.gmra.mxu0 %vm242_vm0, %v5844_v47 }
 0x1b8   : > { %v934_v58 = vadd.f32 %v892_v35, %v647_v61  ;;  %v649_v62 = vpop.f32.mrf.mxu1  ;;  %v1171_v63 = vpop.f32.mrf.mxu3 }
 0x1b9   : > { %v650_v46 = vadd.f32 %v649_v62, %v5846_v1 }
 0x1ba   : > { %v1213_v40 = vadd.f32 %v1171_v63, %v934_v58 }
 0x1bb   : > { %3689 = vmatmul.msk.f32.gmra.mxu1 %vm242_vm0, %v5841_v11 }
 0x1bc   : > { %v5132_v15 = vadd.f32 %v1449_v13, %v1213_v40  ;;  %3757 = vmatmul.msk.f32.gmra.mxu2 %vm242_vm0, %v5845_v45  ;;  %v1452_v0 = vpop.f32.mrf.mxu0  ;;  %v3792_v40 = vld [vmem:[%s4286_s9 + $0xe1] sm:$0xff] }
 0x1bd   : > { %3825 = vmatmul.msk.f32.gmra.mxu3 %vm242_vm0, %v3789_v21  ;;  %v5850_v45 = vld [vmem:[#allocation30_spill] sm:$0xff] }
 0x1bf   : > { %v895_v24 = vpop.f32.mrf.mxu2  ;;  %3893 = vmatmul.msk.f32.gmra.mxu0 %vm242_vm0, %v5847_v22 }
 0x1c0   : > { %v935_v44 = vadd.f32 %v895_v24, %v650_v46  ;;  %v652_v23 = vpop.f32.mrf.mxu1  ;;  %v1174_v2 = vpop.f32.mrf.mxu3 }
 0x1c1   : > { %v653_v39 = vadd.f32 %v652_v23, %v5848_v50  ;;  %v3793_v23 = vld [vmem:[%s4286_s9 + $0xf1] sm:$0xff] }
 0x1c2   : > { %v1214_v6 = vadd.f32 %v1174_v2, %v935_v44 }
 0x1c3   : > { %3690 = vmatmul.msk.f32.gmra.mxu1 %vm242_vm0, %v5844_v47 }
 0x1c4   : > { %v5143_v56 = vadd.f32 %v1452_v0, %v1214_v6  ;;  %3758 = vmatmul.msk.f32.gmra.mxu2 %vm242_vm0, %v4780_v29  ;;  %v1455_v34 = vpop.f32.mrf.mxu0 }
 0x1c5   : > { %3826 = vmatmul.msk.f32.gmra.mxu3 %vm242_vm0, %v3790_v31 }
 0x1c7   : > { %v898_v11 = vpop.f32.mrf.mxu2  ;;  %3894 = vmatmul.msk.f32.gmra.mxu0 %vm242_vm0, %v4812_v43 }
 0x1c8   : > { %v936_v55 = vadd.f32 %v898_v11, %v653_v39  ;;  %v655_v36 = vpop.f32.mrf.mxu1  ;;  %v1177_v26 = vpop.f32.mrf.mxu3 }
 0x1c9   : > { %v656_v61 = vadd.f32 %v655_v36, %v5849_v14  ;;  %v3862_v36 = vld [vmem:[%s4286_s9 + $0xfa] sm:$0xff] }
 0x1ca   : > { %v1215_v38 = vadd.f32 %v1177_v26, %v936_v55  ;;  %v5852_v26 = vld [vmem:[#allocation33_spill] sm:$0xff] }
 0x1cb   : > { %3691 = vmatmul.msk.f32.gmra.mxu1 %vm242_vm0, %v5847_v22 }
 0x1cc   : > { %v5154_v13 = vadd.f32 %v1455_v34, %v1215_v38  ;;  %3759 = vmatmul.msk.f32.gmra.mxu2 %vm242_vm0, %v4800_v27  ;;  %v1458_v29 = vpop.f32.mrf.mxu0 }
 0x1cd   : > { %3827 = vmatmul.msk.f32.gmra.mxu3 %vm242_vm0, %v3791_v20 }
 0x1cf   : > { %v901_v35 = vpop.f32.mrf.mxu2  ;;  %3895 = vmatmul.msk.f32.gmra.mxu0 %vm242_vm0, %v4829_v4 }
 0x1d0   : > { %v937_v58 = vadd.f32 %v901_v35, %v656_v61  ;;  %v658_v47 = vpop.f32.mrf.mxu1  ;;  %v1180_v62 = vpop.f32.mrf.mxu3 }
 0x1d1   : > { %v659_v0 = vadd.f32 %v658_v47, %v5850_v45  ;;  %v5853_v45 = vld [vmem:[#allocation34_spill] sm:$0xff] }
 0x1d2   : > { %v1216_v63 = vadd.f32 %v1180_v62, %v937_v58  ;;  %v3727_v58 = vld [vmem:[%s4286_s9 + $0x108] sm:$0xff] }
 0x1d3   : > { %3692 = vmatmul.msk.f32.gmra.mxu1 %vm242_vm0, %v4812_v43  ;;  %v5851_v43 = vld [vmem:[#allocation32_spill] sm:$0xff]  ;;  %v3795_v62 = vld [vmem:[%s4286_s9 + $0x109] sm:$0xff] }
 0x1d4   : > { %v5165_v21 = vadd.f32 %v1458_v29, %v1216_v63  ;;  %3760 = vmatmul.msk.f32.gmra.mxu2 %vm242_vm0, %v4815_v16  ;;  %v1461_v27 = vpop.f32.mrf.mxu0 }
 0x1d5   : > { %3828 = vmatmul.msk.f32.gmra.mxu3 %vm242_vm0, %v3792_v40 }
 0x1d7   : > { %v904_v1 = vpop.f32.mrf.mxu2  ;;  %3896 = vmatmul.msk.f32.gmra.mxu0 %vm242_vm0, %v4846_v7 }
 0x1d8   : > { %v938_v46 = vadd.f32 %v904_v1, %v659_v0  ;;  %v1183_v24 = vpop.f32.mrf.mxu3  ;;  %v1646_v44 = vpop.f32.mrf.mxu1 }
 0x1d9   : > { %v1742_v6 = vadd.f32 %v1646_v44, %v5851_v43 }
 0x1da   : > { %v1217_v22 = vadd.f32 %v1183_v24, %v938_v46 }
 0x1db   : > { %3693 = vmatmul.msk.f32.gmra.mxu1 %vm242_vm0, %v4829_v4  ;;  %v5189_v4 = vld [vmem:[%s5765_s2] ss:$0 sm:$0xff] }
 0x1dc   : > { %v5176_v2 = vadd.f32 %v1461_v27, %v1217_v22  ;;  %3761 = vmatmul.msk.f32.gmra.mxu2 %vm242_vm0, %v4832_v18  ;;  %v2481_v16 = vpop.f32.mrf.mxu0  ;;  %v3794_v18 = vld [vmem:[%s4286_s9 + $0xf9] sm:$0xff]  ;;  %v3863_v27 = vld [vmem:[%s4286_s9 + $0x10a] sm:$0xff] }
 0x1dd   : > { %3829 = vmatmul.msk.f32.gmra.mxu3 %vm242_vm0, %v3793_v23 }
 0x1df   : > { %v1925_v31 = vpop.f32.mrf.mxu2  ;;  %3897 = vmatmul.msk.f32.gmra.mxu0 %vm242_vm0, %v4863_v25 }
 0x1e0   : > { %v2021_v34 = vadd.f32 %v1925_v31, %v1742_v6  ;;  %v1649_v50 = vpop.f32.mrf.mxu1  ;;  %v2203_v39 = vpop.f32.mrf.mxu3  ;;  %v3728_v6 = vld [vmem:[%s4286_s9 + $0x110] sm:$0xff] }
 0x1e1   : > { %v1743_v38 = vadd.f32 %v1649_v50, %v5852_v26 }
 0x1e2   : > { %v2299_v11 = vadd.f32 %v2203_v39, %v2021_v34  ;;  %v3796_v34 = vld [vmem:[%s4286_s9 + $0x111] sm:$0xff] }
 0x1e3   : > { %3694 = vmatmul.msk.f32.gmra.mxu1 %vm242_vm0, %v4846_v7 }
 0x1e4   : > { %v2577_v55 = vadd.f32 %v2481_v16, %v2299_v11  ;;  %3762 = vmatmul.msk.f32.gmra.mxu2 %vm242_vm0, %v4849_v5  ;;  %v2484_v25 = vpop.f32.mrf.mxu0  ;;  %v3659_v5 = vld [vmem:[%s4286_s9 + $0xf2] sm:$0xff] }
 0x1e5   : > { %3830 = vmatmul.msk.f32.gmra.mxu3 %vm242_vm0, %v3794_v18  ;;  %v3864_v11 = vld [vmem:[%s4286_s9 + $0x112] sm:$0xff] }
 0x1e6   : > { %v5199_v20 = vadd.f32 %v5189_v4, %v2577_v55  ;;  %v5854_v18 = vld [vmem:[#allocation35_spill] sm:$0xff] }
 0x1e7   : > { %v1928_v29 = vpop.f32.mrf.mxu2  ;;  %3898 = vmatmul.msk.f32.gmra.mxu0 %vm242_vm0, %v3862_v36 }
 0x1e8   : > { %v3913_v14 = vmul.f32 -1.442695, %v5199_v20  ;;  %v2022_v61 = vadd.f32 %v1928_v29, %v1743_v38  ;;  %v1652_v7 = vpop.f32.mrf.mxu1  ;;  %v2206_v35 = vpop.f32.mrf.mxu3 }
 0x1e9   : > { %v1744_v0 = vadd.f32 %v1652_v7, %v5853_v45 }
 0x1ea   : > { %4006 = vpow2.f32 %v3913_v14  ;;  %v2300_v47 = vadd.f32 %v2206_v35, %v2022_v61 }
 0x1eb   : > { %3695 = vmatmul.msk.f32.gmra.mxu1 %vm242_vm0, %v3659_v5  ;;  %v3729_v5 = vld [vmem:[%s4286_s9 + $0x120] sm:$0xff] }
 0x1ec   : > { %v2578_v63 = vadd.f32 %v2484_v25, %v2300_v47  ;;  %3763 = vmatmul.msk.f32.gmra.mxu2 %vm242_vm0, %v3727_v58  ;;  %v2487_v40 = vpop.f32.mrf.mxu0  ;;  %v3797_v47 = vld [vmem:[%s4286_s9 + $0x121] sm:$0xff] }
 0x1ed   : > { %3831 = vmatmul.msk.f32.gmra.mxu3 %vm242_vm0, %v3795_v62 }
 0x1ee   : > { %v5212_v1 = vadd.f32 %v5189_v4, %v2578_v63 }
 0x1ef   : > { %v1931_v46 = vpop.f32.mrf.mxu2  ;;  %3899 = vmatmul.msk.f32.gmra.mxu0 %vm242_vm0, %v3863_v27 }
 0x1f0   : > { %v4007_v24 = vpop.eup %4006  ;;  %v3914_v44 = vmul.f32 -1.442695, %v5212_v1  ;;  %v2023_v22 = vadd.f32 %v1931_v46, %v1744_v0  ;;  %v1655_v16 = vpop.f32.mrf.mxu1  ;;  %v5238_v0 = vld [vmem:[%s4286_s9 + $0x122] sm:$0xff] }
 0x1f1   : > { %v2741_v23 = vadd.f32 1.0, %v4007_v24  ;;  %v2209_v43 = vpop.f32.mrf.mxu3  ;;  %v1745_v55 = vadd.f32 %v1655_v16, %v5854_v18 }
 0x1f2   : > { %4008 = vpow2.f32 %v3914_v44  ;;  %v2301_v31 = vadd.f32 %v2209_v43, %v2023_v22 }
 0x1f3   : > { %4010 = vrcp.f32 %v2741_v23  ;;  %3696 = vmatmul.msk.f32.gmra.mxu1 %vm242_vm0, %v3862_v36  ;;  %v2782_v24 = vand.u32 2147483647, %v2741_v23  ;;  %vm2778_vm2 = vweird.f32 %v2741_v23 }
 0x1f4   : > { %v2579_v50 = vadd.f32 %v2487_v40, %v2301_v31  ;;  %3764 = vmatmul.msk.f32.gmra.mxu2 %vm242_vm0, %v3728_v6  ;;  %v2490_v39 = vpop.f32.mrf.mxu0  ;;  %v2784_v40 = vand.u32 2147483648, %v2741_v23 }
 0x1f5   : > { %3832 = vmatmul.msk.f32.gmra.mxu3 %vm242_vm0, %v3796_v34  ;;  %vm2783_vm4 = vcmp.eq.f32.partialorder %v2782_v24, 8.507059e+37 }
 0x1f6   : > { %v5224_v25 = vadd.f32 %v5189_v4, %v2579_v50  ;;  %v2785_v34 = vor.u32 1.1754944e-38, %v2784_v40 }
 0x1f7   : > { %v1934_v26 = vpop.f32.mrf.mxu2  ;;  %3900 = vmatmul.msk.f32.gmra.mxu0 %vm242_vm0, %v3864_v11 }
 0x1f8   : > { %v4009_v38 = vpop.eup %4008  ;;  %v3915_v29 = vmul.f32 -1.442695, %v5224_v25  ;;  %v2024_v14 = vadd.f32 %v1934_v26, %v1745_v55  ;;  %v1658_v7 = vpop.f32.mrf.mxu1  ;;  %v3730_v55 = vld [vmem:[%s4286_s9 + $0x128] sm:$0xff] }
 0x1f9   : > { %v4011_v36 = vpop.eup %4010  ;;  %v5229_v61 = vadd.f32 1.0, %v4009_v38  ;;  %v2212_v35 = vpop.f32.mrf.mxu3  ;;  %v1746_v22 = vadd.f32 %v1658_v7, %v4887_v52 }
 0x1fa   : > { %v2774_v58 = vmul.f32 %v4011_v36, %v2741_v23  ;;  %4012 = vpow2.f32 %v3915_v29  ;;  %v2302_v63 = vadd.f32 %v2212_v35, %v2024_v14  ;;  %vm2779_vm1 = vweird.f32 %v4011_v36  ;;  %v3798_v14 = vld [vmem:[%s4286_s9 + $0x129] sm:$0xff] }
 0x1fb   : > { %4014 = vrcp.f32 %v5229_v61  ;;  %3697 = vmatmul.msk.f32.gmra.mxu1 %vm242_vm0, %v3863_v27  ;;  %vm2780_vm3 = vmor %vm2778_vm2, %vm2779_vm1  ;;  %vm2793_vm6 = vweird.f32 %v5229_v61 }
 0x1fc   : > { %v2775_v62 = vsub.f32 1.0, %v2774_v58  ;;  %3765 = vmatmul.msk.f32.gmra.mxu2 %vm242_vm0, %v3729_v5  ;;  %v2493_v45 = vpop.f32.mrf.mxu0  ;;  %v2580_v44 = vadd.f32 %v2490_v39, %v2302_v63  ;;  %v2799_v5 = vand.u32 2147483648, %v5229_v61 }
 0x1fd   : > { %3833 = vmatmul.msk.f32.gmra.mxu3 %vm242_vm0, %v3797_v47  ;;  %v5261_v47 = vld [vmem:[%s4286_s9 + $0x12a] sm:$0xff] }
 0x1fe   : > { %v2776_v46 = vmul.f32 %v4011_v36, %v2775_v62  ;;  %v5245_v6 = vadd.f32 %v5189_v4, %v2580_v44 }
 0x1ff   : > { %v1937_v16 = vpop.f32.mrf.mxu2  ;;  %3901 = vmatmul.msk.f32.gmra.mxu0 %vm242_vm0, %v5238_v0 }
 0x200   : > { %v4013_v43 = vpop.eup %4012  ;;  %v2777_v27 = vadd.f32 %v4011_v36, %v2776_v46  ;;  %v2025_v39 = vadd.f32 %v1937_v16, %v1746_v22  ;;  %v1661_v52 = vpop.f32.mrf.mxu1  ;;  %v3916_v38 = vmul.f32 -1.442695, %v5245_v6  ;;  %v2800_v22 = vor.u32 1.1754944e-38, %v2799_v5 }
 0x201   : > { %v4015_v31 = vpop.eup %4014  ;;  %v5249_v50 = vadd.f32 1.0, %v4013_v43  ;;  %v2215_v18 = vpop.f32.mrf.mxu3  ;;  %v1747_v63 = vadd.f32 %v1661_v52, %v4901_v48 }
 0x202   : > { %v2781_v26 = vsel %vm2780_vm3, %v4011_v36, %v2777_v27  ;;  %v2789_v23 = vmul.f32 %v4015_v31, %v5229_v61  ;;  %v2303_v36 = vadd.f32 %v2215_v18, %v2025_v39  ;;  %vm2794_vm5 = vweird.f32 %v4015_v31  ;;  %v3731_v27 = vld [vmem:[%s4286_s9 + $0x138] sm:$0xff] }
 0x203   : > { %v2786_v29 = vsel %vm2783_vm4, %v2785_v34, %v2781_v26  ;;  %4016 = vrcp.f32 %v5249_v50  ;;  %3698 = vmatmul.msk.f32.gmra.mxu1 %vm242_vm0, %v3864_v11  ;;  %vm2795_vm7 = vmor %vm2793_vm6, %vm2794_vm5  ;;  %v3799_v26 = vld [vmem:[%s4286_s9 + $0x139] sm:$0xff]  ;;  %vm2808_vm10 = vweird.f32 %v5249_v50 }
 0x204   : > { %v3253_v7 = vmul.f32 %v2786_v29, %v5199_v20  ;;  %v2790_v35 = vsub.f32 1.0, %v2789_v23  ;;  %4018 = vpow2.f32 %v3916_v38  ;;  %3766 = vmatmul.msk.f32.gmra.mxu2 %vm242_vm0, %v3730_v55  ;;  %v2496_v58 = vpop.f32.mrf.mxu0  ;;  %v2797_v20 = vand.u32 2147483647, %v5229_v61 }
 0x205   : > { %3834 = vmatmul.msk.f32.gmra.mxu3 %vm242_vm0, %v3798_v14  ;;  %v2581_v11 = vadd.f32 %v2493_v45, %v2303_v36  ;;  %v2814_v29 = vand.u32 2147483648, %v5249_v50 }
 0x206   : > { %3285 = vst [vmem:[%s5263_s10] sm:$0xff] %v3253_v7  ;;  %v2791_v62 = vmul.f32 %v4015_v31, %v2790_v35  ;;  %vm2798_vm8 = vcmp.eq.f32.partialorder %v2797_v20, 8.507059e+37  ;;  %v5289_v7 = vld [vmem:[%s4286_s9 + $0x13a] sm:$0xff] }
 0x207   : > { %v1940_v40 = vpop.f32.mrf.mxu2  ;;  %3902 = vmatmul.msk.f32.gmra.mxu0 %vm242_vm0, %v5261_v47  ;;  %v5273_v16 = vadd.f32 %v5189_v4, %v2581_v11 }
 0x208   : > { %v2792_v46 = vadd.f32 %v4015_v31, %v2791_v62  ;;  %v2026_v24 = vadd.f32 %v1940_v40, %v1747_v63  ;;  %v1664_v43 = vpop.f32.mrf.mxu1  ;;  %v2815_v63 = vor.u32 1.1754944e-38, %v2814_v29 }
 0x209   : > { %v4017_v44 = vpop.eup %4016  ;;  %v2218_v48 = vpop.f32.mrf.mxu3  ;;  %v3917_v18 = vmul.f32 -1.442695, %v5273_v16 }
 0x20a   : > { %v4019_v34 = vpop.eup %4018  ;;  %v2796_v45 = vsel %vm2795_vm7, %v4015_v31, %v2792_v46  ;;  %v2804_v61 = vmul.f32 %v4017_v44, %v5249_v50  ;;  %v2304_v55 = vadd.f32 %v2218_v48, %v2026_v24  ;;  %vm2809_vm9 = vweird.f32 %v4017_v44 }
 0x20b   : > { %v2801_v39 = vsel %vm2798_vm8, %v2800_v22, %v2796_v45  ;;  %v5277_v52 = vadd.f32 1.0, %v4019_v34  ;;  %3699 = vmatmul.msk.f32.gmra.mxu1 %vm242_vm0, %v5238_v0  ;;  %v2812_v31 = vand.u32 2147483647, %v5249_v50  ;;  %vm2810_vm11 = vmor %vm2808_vm10, %vm2809_vm9 }
 0x20c   : > { %v3254_v23 = vmul.f32 %v2801_v39, %v5212_v1  ;;  %v2805_v38 = vsub.f32 1.0, %v2804_v61  ;;  %3767 = vmatmul.msk.f32.gmra.mxu2 %vm242_vm0, %v3731_v27  ;;  %v2499_v14 = vpop.f32.mrf.mxu0  ;;  %v1748_v1 = vadd.f32 %v1664_v43, %v4911_v41  ;;  %v2582_v5 = vadd.f32 %v2496_v58, %v2304_v55  ;;  %v3732_v58 = vld [vmem:[%s4286_s9 + $0x140] sm:$0xff] }
 0x20d   : > { %4020 = vrcp.f32 %v5277_v52  ;;  %3835 = vmatmul.msk.f32.gmra.mxu3 %vm242_vm0, %v3799_v26  ;;  %vm2813_vm12 = vcmp.eq.f32.partialorder %v2812_v31, 8.507059e+37  ;;  %v3800_v43 = vld [vmem:[%s4286_s9 + $0x141] sm:$0xff]  ;;  %v2829_v26 = vand.u32 2147483648, %v5277_v52  ;;  %vm2823_vm14 = vweird.f32 %v5277_v52 }
 0x20e   : > { %3286 = vst [vmem:[%s5263_s10 + $0x8] sm:$0xff] %v3254_v23  ;;  %v2806_v35 = vmul.f32 %v4017_v44, %v2805_v38  ;;  %4022 = vpow2.f32 %v3917_v18  ;;  %v5296_v62 = vadd.f32 %v5189_v4, %v2582_v5  ;;  %v5312_v39 = vld [vmem:[%s4286_s9 + $0x142] sm:$0xff] }
 0x20f   : > { %v1943_v0 = vpop.f32.mrf.mxu2  ;;  %3903 = vmatmul.msk.f32.gmra.mxu0 %vm242_vm0, %v5289_v7 }
 0x210   : > { %v2807_v36 = vadd.f32 %v4017_v44, %v2806_v35  ;;  %v2027_v20 = vadd.f32 %v1943_v0, %v1748_v1  ;;  %v1667_v11 = vpop.f32.mrf.mxu1  ;;  %v3918_v46 = vmul.f32 -1.442695, %v5296_v62 }
 0x211   : > { %v2221_v41 = vpop.f32.mrf.mxu3  ;;  %v1749_v55 = vadd.f32 %v1667_v11, %v4921_v30 }
 0x212   : > { %v2811_v40 = vsel %vm2810_vm11, %v4017_v44, %v2807_v36  ;;  %v2305_v50 = vadd.f32 %v2221_v41, %v2027_v20  ;;  %4024 = vpow2.f32 %v3918_v46  ;;  %v2830_v36 = vor.u32 1.1754944e-38, %v2829_v26  ;;  %v5336_v46 = vld [vmem:[%s4286_s9 + $0x152] sm:$0xff] }
 0x213   : > { %v4021_v24 = vpop.eup %4020  ;;  %v2816_v22 = vsel %vm2813_vm12, %v2815_v63, %v2811_v40  ;;  %3700 = vmatmul.msk.f32.gmra.mxu1 %vm242_vm0, %v5261_v47  ;;  %v3801_v63 = vld [vmem:[%s4286_s9 + $0x151] sm:$0xff] }
 0x214   : > { %v4023_v48 = vpop.eup %4022  ;;  %v3255_v27 = vmul.f32 %v2816_v22, %v5224_v25  ;;  %v2819_v34 = vmul.f32 %v4021_v24, %v5277_v52  ;;  %3768 = vmatmul.msk.f32.gmra.mxu2 %vm242_vm0, %v3732_v58  ;;  %v2583_v45 = vadd.f32 %v2499_v14, %v2305_v50  ;;  %v2502_v61 = vpop.f32.mrf.mxu0  ;;  %v2827_v25 = vand.u32 2147483647, %v5277_v52  ;;  %v3733_v14 = vld [vmem:[%s4286_s9 + $0x150] sm:$0xff] }
 0x215   : > { %v5309_v44 = vadd.f32 1.0, %v4023_v48  ;;  %3836 = vmatmul.msk.f32.gmra.mxu3 %vm242_vm0, %v3800_v43  ;;  %vm2824_vm13 = vweird.f32 %v4021_v24 }
 0x216   : > { %3287 = vst [vmem:[%s5263_s10 + $0x10] sm:$0xff] %v3255_v27  ;;  %v2820_v18 = vsub.f32 1.0, %v2819_v34  ;;  %v5321_v38 = vadd.f32 %v5189_v4, %v2583_v45  ;;  %vm2825_vm15 = vmor %vm2823_vm14, %vm2824_vm13  ;;  %vm2828_vm1 = vcmp.eq.f32.partialorder %v2827_v25, 8.507059e+37 }
 0x217   : > { %4026 = vrcp.f32 %v5309_v44  ;;  %v1946_v47 = vpop.f32.mrf.mxu2  ;;  %3904 = vmatmul.msk.f32.gmra.mxu0 %vm242_vm0, %v5312_v39  ;;  %v2842_v34 = vand.u32 2147483647, %v5309_v44  ;;  %vm2838_vm3 = vweird.f32 %v5309_v44 }
 0x218   : > { %v2821_v23 = vmul.f32 %v4021_v24, %v2820_v18  ;;  %v2028_v31 = vadd.f32 %v1946_v47, %v1749_v55  ;;  %v1670_v30 = vpop.f32.mrf.mxu1  ;;  %v4025_v35 = vpop.eup %4024  ;;  %v3919_v5 = vmul.f32 -1.442695, %v5321_v38  ;;  %v3734_v18 = vld [vmem:[%s4286_s9 + $0x158] sm:$0xff] }
 0x219   : > { %v2224_v29 = vpop.f32.mrf.mxu3  ;;  %v5328_v20 = vadd.f32 1.0, %v4025_v35  ;;  %v1750_v22 = vadd.f32 %v1670_v30, %v4931_v9  ;;  %vm2843_vm5 = vcmp.eq.f32.partialorder %v2842_v34, 8.507059e+37 }
 0x21a   : > { %v2822_v1 = vadd.f32 %v4021_v24, %v2821_v23  ;;  %v2306_v0 = vadd.f32 %v2224_v29, %v2028_v31  ;;  %4028 = vpow2.f32 %v3919_v5  ;;  %v3802_v31 = vld [vmem:[%s4286_s9 + $0x159] sm:$0xff] }
 0x21b   : > { %3701 = vmatmul.msk.f32.gmra.mxu1 %vm242_vm0, %v5289_v7  ;;  %4030 = vrcp.f32 %v5328_v20  ;;  %v5362_v5 = vld [vmem:[%s4286_s9 + $0x15a] sm:$0xff]  ;;  %vm2853_vm7 = vweird.f32 %v5328_v20 }
 0x21c   : > { %v2826_v11 = vsel %vm2825_vm15, %v4021_v24, %v2822_v1  ;;  %v2584_v41 = vadd.f32 %v2502_v61, %v2306_v0  ;;  %3769 = vmatmul.msk.f32.gmra.mxu2 %vm242_vm0, %v3733_v14  ;;  %v2505_v40 = vpop.f32.mrf.mxu0 }
 0x21d   : > { %v4027_v52 = vpop.eup %4026  ;;  %v2831_v58 = vsel %vm2828_vm1, %v2830_v36, %v2826_v11  ;;  %3837 = vmatmul.msk.f32.gmra.mxu3 %vm242_vm0, %v3801_v63  ;;  %v2857_v11 = vand.u32 2147483647, %v5328_v20 }
 0x21e   : > { %v3256_v50 = vmul.f32 %v2831_v58, %v5245_v6  ;;  %v2834_v24 = vmul.f32 %v4027_v52, %v5309_v44  ;;  %v5343_v7 = vadd.f32 %v5189_v4, %v2584_v41  ;;  %v2844_v6 = vand.u32 2147483648, %v5309_v44 }
 0x21f   : > { %v1949_v43 = vpop.f32.mrf.mxu2  ;;  %3905 = vmatmul.msk.f32.gmra.mxu0 %vm242_vm0, %v5336_v46  ;;  %vm2839_vm2 = vweird.f32 %v4027_v52  ;;  %v2859_v41 = vand.u32 2147483648, %v5328_v20  ;;  %vm2858_vm9 = vcmp.eq.f32.partialorder %v2857_v11, 8.507059e+37 }
 0x220   : > { %3288 = vst [vmem:[%s5263_s10 + $0x18] sm:$0xff] %v3256_v50  ;;  %v2835_v48 = vsub.f32 1.0, %v2834_v24  ;;  %v2029_v27 = vadd.f32 %v1949_v43, %v1750_v22  ;;  %v3920_v45 = vmul.f32 -1.442695, %v5343_v7  ;;  %v1673_v9 = vpop.f32.mrf.mxu1  ;;  %v4029_v55 = vpop.eup %4028  ;;  %vm2840_vm4 = vmor %vm2838_vm3, %vm2839_vm2  ;;  %v2845_v35 = vor.u32 1.1754944e-38, %v2844_v6 }
 0x221   : > { %v2227_v61 = vpop.f32.mrf.mxu3  ;;  %v4031_v47 = vpop.eup %4030  ;;  %v5352_v23 = vadd.f32 1.0, %v4029_v55  ;;  %v1751_v44 = vadd.f32 %v1673_v9, %v4941_v59  ;;  %v2860_v6 = vor.u32 1.1754944e-38, %v2859_v41  ;;  %v3803_v9 = vld [vmem:[%s4286_s9 + $0x169] sm:$0xff] }
 0x222   : > { %v2836_v25 = vmul.f32 %v4027_v52, %v2835_v48  ;;  %v2307_v26 = vadd.f32 %v2227_v61, %v2029_v27  ;;  %4032 = vpow2.f32 %v3920_v45  ;;  %v2849_v29 = vmul.f32 %v4031_v47, %v5328_v20  ;;  %v3735_v48 = vld [vmem:[%s4286_s9 + $0x168] sm:$0xff] }
 0x223   : > { %3702 = vmatmul.msk.f32.gmra.mxu1 %vm242_vm0, %v5312_v39  ;;  %4034 = vrcp.f32 %v5352_v23  ;;  %vm2854_vm6 = vweird.f32 %v4031_v47  ;;  %vm2868_vm11 = vweird.f32 %v5352_v23 }
 0x224   : > { %v2837_v30 = vadd.f32 %v4027_v52, %v2836_v25  ;;  %v2585_v14 = vadd.f32 %v2505_v40, %v2307_v26  ;;  %3770 = vmatmul.msk.f32.gmra.mxu2 %vm242_vm0, %v3734_v18  ;;  %v2508_v1 = vpop.f32.mrf.mxu0  ;;  %v2850_v36 = vsub.f32 1.0, %v2849_v29  ;;  %vm2855_vm8 = vmor %vm2853_vm7, %vm2854_vm6  ;;  %v5388_v25 = vld [vmem:[%s4286_s9 + $0x16a] sm:$0xff]  ;;  %v2872_v29 = vand.u32 2147483647, %v5352_v23 }
 0x225   : > { %3838 = vmatmul.msk.f32.gmra.mxu3 %vm242_vm0, %v3802_v31 }
 0x226   : > { %v2841_v0 = vsel %vm2840_vm4, %v4027_v52, %v2837_v30  ;;  %v5366_v63 = vadd.f32 %v5189_v4, %v2585_v14  ;;  %v2851_v52 = vmul.f32 %v4031_v47, %v2850_v36  ;;  %v2874_v14 = vand.u32 2147483648, %v5352_v23 }
 0x227   : > { %v2846_v39 = vsel %vm2843_vm5, %v2845_v35, %v2841_v0  ;;  %v1952_v58 = vpop.f32.mrf.mxu2  ;;  %3906 = vmatmul.msk.f32.gmra.mxu0 %vm242_vm0, %v5362_v5  ;;  %vm2873_vm13 = vcmp.eq.f32.partialorder %v2872_v29, 8.507059e+37 }
 0x228   : > { %v3257_v40 = vmul.f32 %v2846_v39, %v5273_v16  ;;  %v3921_v50 = vmul.f32 -1.442695, %v5366_v63  ;;  %v2030_v59 = vadd.f32 %v1952_v58, %v1751_v44  ;;  %v4033_v24 = vpop.eup %4032  ;;  %v1676_v22 = vpop.f32.mrf.mxu1  ;;  %v2852_v27 = vadd.f32 %v4031_v47, %v2851_v52  ;;  %v3736_v39 = vld [vmem:[%s4286_s9 + $0x170] sm:$0xff] }
 0x229   : > { %v2230_v43 = vpop.f32.mrf.mxu3  ;;  %v5378_v34 = vadd.f32 1.0, %v4033_v24  ;;  %v4035_v16 = vpop.eup %4034  ;;  %v2875_v52 = vor.u32 1.1754944e-38, %v2874_v14 }
 0x22a   : > { %3289 = vst [vmem:[%s5263_s10 + $0x20] sm:$0xff] %v3257_v40  ;;  %4036 = vpow2.f32 %v3921_v50  ;;  %v2308_v45 = vadd.f32 %v2230_v43, %v2030_v59  ;;  %v2856_v61 = vsel %vm2855_vm8, %v4031_v47, %v2852_v27  ;;  %v2864_v18 = vmul.f32 %v4035_v16, %v5352_v23  ;;  %v3804_v59 = vld [vmem:[%s4286_s9 + $0x171] sm:$0xff] }
 0x22b   : > { %4038 = vrcp.f32 %v5378_v34  ;;  %3703 = vmatmul.msk.f32.gmra.mxu1 %vm242_vm0, %v5336_v46  ;;  %v2861_v20 = vsel %vm2858_vm9, %v2860_v6, %v2856_v61  ;;  %v1752_v47 = vadd.f32 %v1676_v22, %v4951_v28  ;;  %vm2869_vm10 = vweird.f32 %v4035_v16  ;;  %v5413_v27 = vld [vmem:[%s4286_s9 + $0x172] sm:$0xff] }
 0x22c   : > { %3771 = vmatmul.msk.f32.gmra.mxu2 %vm242_vm0, %v3735_v48  ;;  %v2511_v55 = vpop.f32.mrf.mxu0  ;;  %v3258_v26 = vmul.f32 %v2861_v20, %v5296_v62  ;;  %v2865_v31 = vsub.f32 1.0, %v2864_v18  ;;  %v2586_v30 = vadd.f32 %v2508_v1, %v2308_v45  ;;  %vm2870_vm12 = vmor %vm2868_vm11, %vm2869_vm10  ;;  %v2889_v45 = vand.u32 2147483648, %v5378_v34 }
 0x22d   : > { %3839 = vmatmul.msk.f32.gmra.mxu3 %vm242_vm0, %v3803_v9  ;;  %vm2883_vm15 = vweird.f32 %v5378_v34 }
 0x22e   : > { %3290 = vst [vmem:[%s5263_s10 + $0x28] sm:$0xff] %v3258_v26  ;;  %v2866_v0 = vmul.f32 %v4035_v16, %v2865_v31  ;;  %v5397_v36 = vadd.f32 %v5189_v4, %v2586_v30  ;;  %v2890_v29 = vor.u32 1.1754944e-38, %v2889_v45 }
 0x22f   : > { %v1955_v46 = vpop.f32.mrf.mxu2  ;;  %3907 = vmatmul.msk.f32.gmra.mxu0 %vm242_vm0, %v5388_v25 }
 0x230   : > { %v4037_v35 = vpop.eup %4036  ;;  %v2031_v62 = vadd.f32 %v1955_v46, %v1752_v47  ;;  %v1679_v1 = vpop.f32.mrf.mxu1  ;;  %v2867_v41 = vadd.f32 %v4035_v16, %v2866_v0  ;;  %v3922_v58 = vmul.f32 -1.442695, %v5397_v36  ;;  %v3737_v47 = vld [vmem:[%s4286_s9 + $0x180] sm:$0xff] }
 0x231   : > { %v5401_v28 = vadd.f32 1.0, %v4037_v35  ;;  %v2233_v44 = vpop.f32.mrf.mxu3  ;;  %v4039_v11 = vpop.eup %4038 }
 0x232   : > { %v2309_v40 = vadd.f32 %v2233_v44, %v2031_v62  ;;  %v2879_v50 = vmul.f32 %v4039_v11, %v5378_v34  ;;  %v2871_v24 = vsel %vm2870_vm12, %v4035_v16, %v2867_v41  ;;  %v1753_v16 = vadd.f32 %v1679_v1, %v4961_v8  ;;  %v3805_v62 = vld [vmem:[%s4286_s9 + $0x181] sm:$0xff] }
 0x233   : > { %4040 = vrcp.f32 %v5401_v28  ;;  %3704 = vmatmul.msk.f32.gmra.mxu1 %vm242_vm0, %v5362_v5  ;;  %v2876_v23 = vsel %vm2873_vm13, %v2875_v52, %v2871_v24  ;;  %vm2884_vm14 = vweird.f32 %v4039_v11  ;;  %v2887_v5 = vand.u32 2147483647, %v5378_v34 }
 0x234   : > { %4042 = vpow2.f32 %v3922_v58  ;;  %3772 = vmatmul.msk.f32.gmra.mxu2 %vm242_vm0, %v3736_v39  ;;  %v2880_v22 = vsub.f32 1.0, %v2879_v50  ;;  %v2587_v43 = vadd.f32 %v2511_v55, %v2309_v40  ;;  %v2514_v48 = vpop.f32.mrf.mxu0  ;;  %v3259_v6 = vmul.f32 %v2876_v23, %v5321_v38  ;;  %vm2885_vm1 = vmor %vm2883_vm15, %vm2884_vm14  ;;  %v5442_v40 = vld [vmem:[%s4286_s9 + $0x182] sm:$0xff] }
 0x235   : > { %3840 = vmatmul.msk.f32.gmra.mxu3 %vm242_vm0, %v3804_v59  ;;  %vm2888_vm2 = vcmp.eq.f32.partialorder %v2887_v5, 8.507059e+37  ;;  %v2902_v41 = vand.u32 2147483647, %v5401_v28  ;;  %vm2898_vm4 = vweird.f32 %v5401_v28 }
 0x236   : > { %v2881_v9 = vmul.f32 %v4039_v11, %v2880_v22  ;;  %v5421_v61 = vadd.f32 %v5189_v4, %v2587_v43  ;;  %3291 = vst [vmem:[%s5263_s10 + $0x30] sm:$0xff] %v3259_v6  ;;  %v3738_v6 = vld [vmem:[%s4286_s9 + $0x188] sm:$0xff] }
 0x237   : > { %v1958_v18 = vpop.f32.mrf.mxu2  ;;  %3908 = vmatmul.msk.f32.gmra.mxu0 %vm242_vm0, %v5413_v27  ;;  %vm2903_vm6 = vcmp.eq.f32.partialorder %v2902_v41, 8.507059e+37 }
 0x238   : > { %v2032_v20 = vadd.f32 %v1958_v18, %v1753_v16  ;;  %v2882_v55 = vadd.f32 %v4039_v11, %v2881_v9  ;;  %v3923_v8 = vmul.f32 -1.442695, %v5421_v61  ;;  %v1682_v26 = vpop.f32.mrf.mxu1  ;;  %v3806_v18 = vld [vmem:[%s4286_s9 + $0x189] sm:$0xff] }
 0x239   : > { %v4041_v38 = vpop.eup %4040  ;;  %v2236_v31 = vpop.f32.mrf.mxu3  ;;  %v1754_v50 = vadd.f32 %v1682_v26, %v4971_v32  ;;  %v5465_v26 = vld [vmem:[%s4286_s9 + $0x18a] sm:$0xff] }
 0x23a   : > { %v4043_v30 = vpop.eup %4042  ;;  %v2894_v14 = vmul.f32 %v4041_v38, %v5401_v28  ;;  %v2310_v46 = vadd.f32 %v2236_v31, %v2032_v20  ;;  %v2886_v35 = vsel %vm2885_vm1, %v4039_v11, %v2882_v55  ;;  %4044 = vpow2.f32 %v3923_v8 }
 0x23b   : > { %v5431_v0 = vadd.f32 1.0, %v4043_v30  ;;  %v2891_v34 = vsel %vm2888_vm2, %v2890_v29, %v2886_v35  ;;  %3705 = vmatmul.msk.f32.gmra.mxu1 %vm242_vm0, %v5388_v25  ;;  %v2904_v11 = vand.u32 2147483648, %v5401_v28  ;;  %vm2899_vm3 = vweird.f32 %v4041_v38 }
 0x23c   : > { %v2895_v1 = vsub.f32 1.0, %v2894_v14  ;;  %v2588_v44 = vadd.f32 %v2514_v48, %v2310_v46  ;;  %3773 = vmatmul.msk.f32.gmra.mxu2 %vm242_vm0, %v3737_v47  ;;  %v3260_v39 = vmul.f32 %v2891_v34, %v5343_v7  ;;  %v2517_v58 = vpop.f32.mrf.mxu0  ;;  %vm2900_vm5 = vmor %vm2898_vm4, %vm2899_vm3 }
 0x23d   : > { %4046 = vrcp.f32 %v5431_v0  ;;  %3841 = vmatmul.msk.f32.gmra.mxu3 %vm242_vm0, %v3805_v62  ;;  %v2905_v32 = vor.u32 1.1754944e-38, %v2904_v11  ;;  %v2917_v46 = vand.u32 2147483647, %v5431_v0  ;;  %vm2913_vm8 = vweird.f32 %v5431_v0 }
 0x23e   : > { %v2896_v52 = vmul.f32 %v4041_v38, %v2895_v1  ;;  %v5446_v25 = vadd.f32 %v5189_v4, %v2588_v44  ;;  %3292 = vst [vmem:[%s5263_s10 + $0x38] sm:$0xff] %v3260_v39  ;;  %v3739_v44 = vld [vmem:[%s4286_s9 + $0x198] sm:$0xff] }
 0x23f   : > { %v1961_v7 = vpop.f32.mrf.mxu2  ;;  %3909 = vmatmul.msk.f32.gmra.mxu0 %vm242_vm0, %v5442_v40  ;;  %vm2918_vm10 = vcmp.eq.f32.partialorder %v2917_v46, 8.507059e+37 }
 0x240   : > { %v2897_v59 = vadd.f32 %v4041_v38, %v2896_v52  ;;  %v3924_v24 = vmul.f32 -1.442695, %v5446_v25  ;;  %v2033_v23 = vadd.f32 %v1961_v7, %v1754_v50  ;;  %v4045_v22 = vpop.eup %4044  ;;  %v1685_v43 = vpop.f32.mrf.mxu1  ;;  %v3807_v50 = vld [vmem:[%s4286_s9 + $0x199] sm:$0xff] }
 0x241   : > { %v2239_v48 = vpop.f32.mrf.mxu3  ;;  %v5455_v16 = vadd.f32 1.0, %v4045_v22  ;;  %v1755_v47 = vadd.f32 %v1685_v43, %v4981_v37  ;;  %v3875_v22 = vld [vmem:[%s4286_s9 + $0x19a] sm:$0xff] }
 0x242   : > { %v2901_v45 = vsel %vm2900_vm5, %v4041_v38, %v2897_v59  ;;  %4048 = vpow2.f32 %v3924_v24  ;;  %v2311_v5 = vadd.f32 %v2239_v48, %v2033_v23 }
 0x243   : > { %v4047_v28 = vpop.eup %4046  ;;  %v2906_v9 = vsel %vm2903_vm6, %v2905_v32, %v2901_v45  ;;  %4050 = vrcp.f32 %v5455_v16  ;;  %3706 = vmatmul.msk.f32.gmra.mxu1 %vm242_vm0, %v5413_v27  ;;  %v2934_v43 = vand.u32 2147483648, %v5455_v16  ;;  %vm2928_vm12 = vweird.f32 %v5455_v16 }
 0x244   : > { %v3261_v20 = vmul.f32 %v2906_v9, %v5366_v63  ;;  %v2909_v55 = vmul.f32 %v4047_v28, %v5431_v0  ;;  %3774 = vmatmul.msk.f32.gmra.mxu2 %vm242_vm0, %v3738_v6  ;;  %v2589_v38 = vadd.f32 %v2517_v58, %v2311_v5  ;;  %v2520_v8 = vpop.f32.mrf.mxu0  ;;  %v2919_v63 = vand.u32 2147483648, %v5431_v0 }
 0x245   : > { %3842 = vmatmul.msk.f32.gmra.mxu3 %vm242_vm0, %v3806_v18  ;;  %vm2914_vm7 = vweird.f32 %v4047_v28 }
 0x246   : > { %3293 = vst [vmem:[%s5263_s10 + $0x40] sm:$0xff] %v3261_v20  ;;  %v2910_v31 = vsub.f32 1.0, %v2909_v55  ;;  %v5472_v30 = vadd.f32 %v5189_v4, %v2589_v38  ;;  %vm2915_vm9 = vmor %vm2913_vm8, %vm2914_vm7  ;;  %v2920_v58 = vor.u32 1.1754944e-38, %v2919_v63  ;;  %v3740_v55 = vld [vmem:[%s4286_s9 + $0x1a0] sm:$0xff] }
 0x247   : > { %v1964_v29 = vpop.f32.mrf.mxu2  ;;  %3910 = vmatmul.msk.f32.gmra.mxu0 %vm242_vm0, %v5465_v26 }
 0x248   : > { %v4049_v27 = vpop.eup %4048  ;;  %v2911_v14 = vmul.f32 %v4047_v28, %v2910_v31  ;;  %v2034_v35 = vadd.f32 %v1964_v29, %v1755_v47  ;;  %v3925_v37 = vmul.f32 -1.442695, %v5472_v30  ;;  %v1688_v34 = vpop.f32.mrf.mxu1 }
 0x249   : > { %v5477_v62 = vadd.f32 1.0, %v4049_v27  ;;  %v2242_v1 = vpop.f32.mrf.mxu3  ;;  %v4051_v39 = vpop.eup %4050  ;;  %v1756_v48 = vadd.f32 %v1688_v34, %v4991_v57  ;;  %v3808_v27 = vld [vmem:[%s4286_s9 + $0x1a1] sm:$0xff] }
 0x24a   : > { %v2912_v41 = vadd.f32 %v4047_v28, %v2911_v14  ;;  %v2312_v11 = vadd.f32 %v2242_v1, %v2034_v35  ;;  %v2924_v52 = vmul.f32 %v4051_v39, %v5455_v16  ;;  %vm2929_vm11 = vweird.f32 %v4051_v39 }
 0x24b   : > { %4052 = vrcp.f32 %v5477_v62  ;;  %3707 = vmatmul.msk.f32.gmra.mxu1 %vm242_vm0, %v5442_v40  ;;  %v2932_v40 = vand.u32 2147483647, %v5455_v16  ;;  %vm2930_vm13 = vmor %vm2928_vm12, %vm2929_vm11  ;;  %v2949_v34 = vand.u32 2147483648, %v5477_v62  ;;  %vm2943_vm1 = vweird.f32 %v5477_v62 }
 0x24c   : > { %v2916_v7 = vsel %vm2915_vm9, %v4047_v28, %v2912_v41  ;;  %4054 = vpow2.f32 %v3925_v37  ;;  %3775 = vmatmul.msk.f32.gmra.mxu2 %vm242_vm0, %v3739_v44  ;;  %v2925_v0 = vsub.f32 1.0, %v2924_v52  ;;  %v2590_v24 = vadd.f32 %v2520_v8, %v2312_v11  ;;  %v2523_v23 = vpop.f32.mrf.mxu0  ;;  %v3876_v44 = vld [vmem:[%s4286_s9 + $0x1a2] sm:$0xff] }
 0x24d   : > { %v2921_v59 = vsel %vm2918_vm10, %v2920_v58, %v2916_v7  ;;  %3843 = vmatmul.msk.f32.gmra.mxu3 %vm242_vm0, %v3807_v50  ;;  %v2935_v8 = vor.u32 1.1754944e-38, %v2934_v43  ;;  %vm2933_vm14 = vcmp.eq.f32.partialorder %v2932_v40, 8.507059e+37  ;;  %v2947_v37 = vand.u32 2147483647, %v5477_v62 }
 0x24e   : > { %v3262_v32 = vmul.f32 %v2921_v59, %v5397_v36  ;;  %v2926_v6 = vmul.f32 %v4051_v39, %v2925_v0  ;;  %v5495_v45 = vadd.f32 %v5189_v4, %v2590_v24  ;;  %v2950_v7 = vor.u32 1.1754944e-38, %v2949_v34 }
 0x24f   : > { %v1967_v28 = vpop.f32.mrf.mxu2  ;;  %3911 = vmatmul.msk.f32.gmra.mxu0 %vm242_vm0, %v3875_v22  ;;  %vm2948_vm3 = vcmp.eq.f32.partialorder %v2947_v37, 8.507059e+37 }
 0x250   : > { %3294 = vst [vmem:[%s5263_s10 + $0x48] sm:$0xff] %v3262_v32  ;;  %v2035_v9 = vadd.f32 %v1967_v28, %v1756_v48  ;;  %v2927_v5 = vadd.f32 %v4051_v39, %v2926_v6  ;;  %v3926_v57 = vmul.f32 -1.442695, %v5495_v45  ;;  %v1691_v18 = vpop.f32.mrf.mxu1 }
 0x251   : > { %v4053_v36 = vpop.eup %4052  ;;  %v2245_v20 = vpop.f32.mrf.mxu3  ;;  %v1757_v41 = vadd.f32 %v1691_v18, %v4999_v53 }
 0x252   : > { %v4055_v38 = vpop.eup %4054  ;;  %v2939_v31 = vmul.f32 %v4053_v36, %v5477_v62  ;;  %v2313_v47 = vadd.f32 %v2245_v20, %v2035_v9  ;;  %v2931_v63 = vsel %vm2930_vm13, %v4051_v39, %v2927_v5  ;;  %4056 = vpow2.f32 %v3926_v57  ;;  %v5535_v9 = vld [vmem:[%s5765_s2] ss:$0 sm:$0xff] }
 0x253   : > { %v5504_v29 = vadd.f32 1.0, %v4055_v38  ;;  %v2936_v16 = vsel %vm2933_vm14, %v2935_v8, %v2931_v63  ;;  %3708 = vmatmul.msk.f32.gmra.mxu1 %vm242_vm0, %v5465_v26  ;;  %vm2944_vm15 = vweird.f32 %v4053_v36 }
 0x254   : > { %v2940_v14 = vsub.f32 1.0, %v2939_v31  ;;  %v2591_v46 = vadd.f32 %v2523_v23, %v2313_v47  ;;  %3776 = vmatmul.msk.f32.gmra.mxu2 %vm242_vm0, %v3740_v55  ;;  %v3263_v35 = vmul.f32 %v2936_v16, %v5421_v61  ;;  %v2526_v1 = vpop.f32.mrf.mxu0  ;;  %vm2945_vm2 = vmor %vm2943_vm1, %vm2944_vm15 }
 0x255   : > { %4058 = vrcp.f32 %v5504_v29  ;;  %3844 = vmatmul.msk.f32.gmra.mxu3 %vm242_vm0, %v3808_v27  ;;  %v2964_v28 = vand.u32 2147483648, %v5504_v29  ;;  %v2962_v18 = vand.u32 2147483647, %v5504_v29  ;;  %vm2958_vm4 = vweird.f32 %v5504_v29 }
 0x256   : > { %v2941_v39 = vmul.f32 %v4053_v36, %v2940_v14  ;;  %v5517_v11 = vadd.f32 %v5189_v4, %v2591_v46  ;;  %3295 = vst [vmem:[%s5263_s10 + $0x50] sm:$0xff] %v3263_v35 }
 0x257   : > { %v1970_v26 = vpop.f32.mrf.mxu2  ;;  %3912 = vmatmul.msk.f32.gmra.mxu0 %vm242_vm0, %v3876_v44  ;;  %v2965_v27 = vor.u32 1.1754944e-38, %v2964_v28  ;;  %vm2963_vm6 = vcmp.eq.f32.partialorder %v2962_v18, 8.507059e+37 }
 0x258   : > { %v2942_v61 = vadd.f32 %v4053_v36, %v2941_v39  ;;  %v3927_v58 = vmul.f32 -1.442695, %v5517_v11  ;;  %v2036_v52 = vadd.f32 %v1970_v26, %v1757_v41  ;;  %v4057_v50 = vpop.eup %4056  ;;  %v1694_v53 = vpop.f32.mrf.mxu1 }
 0x259   : > { %v2248_v59 = vpop.f32.mrf.mxu3  ;;  %v5524_v0 = vadd.f32 1.0, %v4057_v50  ;;  %v1758_v40 = vadd.f32 %v1694_v53, %v5010_v54 }
 0x25a   : > { %v2946_v4 = vsel %vm2945_vm2, %v4053_v36, %v2942_v61  ;;  %4060 = vpow2.f32 %v3927_v58  ;;  %v2314_v22 = vadd.f32 %v2248_v59, %v2036_v52 }
 0x25b   : > { %v4059_v24 = vpop.eup %4058  ;;  %v2951_v23 = vsel %vm2948_vm3, %v2950_v7, %v2946_v4  ;;  %4062 = vrcp.f32 %v5524_v0  ;;  %v2979_v44 = vand.u32 2147483648, %v5524_v0  ;;  %v2977_v41 = vand.u32 2147483647, %v5524_v0 }
 0x25c   : > { %v3264_v62 = vmul.f32 %v2951_v23, %v5446_v25  ;;  %v2954_v32 = vmul.f32 %v4059_v24, %v5504_v29  ;;  %v2592_v43 = vadd.f32 %v2526_v1, %v2314_v22  ;;  %v2529_v48 = vpop.f32.mrf.mxu0  ;;  %vm2959_vm0 = vweird.f32 %v4059_v24 }
 0x25d   : > { %vm2960_vm5 = vmor %vm2958_vm4, %vm2959_vm0  ;;  %vm2973_vm8 = vweird.f32 %v5524_v0  ;;  %vm2978_vm10 = vcmp.eq.f32.partialorder %v2977_v41, 8.507059e+37 }
 0x25e   : > { %3296 = vst [vmem:[%s5263_s10 + $0x58] sm:$0xff] %v3264_v62  ;;  %v2955_v6 = vsub.f32 1.0, %v2954_v32  ;;  %v5538_v36 = vadd.f32 %v5535_v9, %v2592_v43 }
 0x25f   : > { %v1973_v25 = vpop.f32.mrf.mxu2 }
 0x260   : > { %v4061_v5 = vpop.eup %4060  ;;  %v2956_v57 = vmul.f32 %v4059_v24, %v2955_v6  ;;  %v2037_v20 = vadd.f32 %v1973_v25, %v1758_v40  ;;  %v3928_v54 = vmul.f32 -1.442695, %v5538_v36  ;;  %v1697_v38 = vpop.f32.mrf.mxu1 }
 0x261   : > { %v5541_v55 = vadd.f32 1.0, %v4061_v5  ;;  %v2251_v8 = vpop.f32.mrf.mxu3  ;;  %v4063_v31 = vpop.eup %4062  ;;  %v1759_v29 = vadd.f32 %v1697_v38, %v5021_v33  ;;  %v2980_v33 = vor.u32 1.1754944e-38, %v2979_v44 }
 0x262   : > { %v2957_v47 = vadd.f32 %v4059_v24, %v2956_v57  ;;  %v2315_v63 = vadd.f32 %v2251_v8, %v2037_v20  ;;  %v2969_v16 = vmul.f32 %v4063_v31, %v5524_v0  ;;  %vm2974_vm7 = vweird.f32 %v4063_v31 }
 0x263   : > { %4064 = vrcp.f32 %v5541_v55  ;;  %vm2975_vm9 = vmor %vm2973_vm8, %vm2974_vm7  ;;  %v2994_v6 = vand.u32 2147483648, %v5541_v55  ;;  %vm2988_vm12 = vweird.f32 %v5541_v55 }
 0x264   : > { %v2961_v14 = vsel %vm2960_vm5, %v4059_v24, %v2957_v47  ;;  %4066 = vpow2.f32 %v3928_v54  ;;  %v2970_v35 = vsub.f32 1.0, %v2969_v16  ;;  %v2593_v37 = vadd.f32 %v2529_v48, %v2315_v63  ;;  %v2532_v34 = vpop.f32.mrf.mxu0 }
 0x265   : > { %v2966_v46 = vsel %vm2963_vm6, %v2965_v27, %v2961_v14  ;;  %v2992_v48 = vand.u32 2147483647, %v5541_v55  ;;  %v2995_v38 = vor.u32 1.1754944e-38, %v2994_v6 }
 0x266   : > { %v3265_v1 = vmul.f32 %v2966_v46, %v5472_v30  ;;  %v2971_v39 = vmul.f32 %v4063_v31, %v2970_v35  ;;  %v5552_v26 = vadd.f32 %v5535_v9, %v2593_v37 }
 0x267   : > { %v1976_v61 = vpop.f32.mrf.mxu2  ;;  %vm2993_vm14 = vcmp.eq.f32.partialorder %v2992_v48, 8.507059e+37 }
 0x268   : > { %3297 = vst [vmem:[%s5263_s10 + $0x60] sm:$0xff] %v3265_v1  ;;  %v2038_v58 = vadd.f32 %v1976_v61, %v1759_v29  ;;  %v2972_v50 = vadd.f32 %v4063_v31, %v2971_v39  ;;  %v3929_v30 = vmul.f32 -1.442695, %v5552_v26  ;;  %v1700_v7 = vpop.f32.mrf.mxu1 }
 0x269   : > { %v4065_v52 = vpop.eup %4064  ;;  %v2254_v53 = vpop.f32.mrf.mxu3  ;;  %v1760_v25 = vadd.f32 %v1700_v7, %v5032_v60 }
 0x26a   : > { %v4067_v59 = vpop.eup %4066  ;;  %v2984_v4 = vmul.f32 %v4065_v52, %v5541_v55  ;;  %v2316_v24 = vadd.f32 %v2254_v53, %v2038_v58  ;;  %v2976_v23 = vsel %vm2975_vm9, %v4063_v31, %v2972_v50  ;;  %4068 = vpow2.f32 %v3929_v30 }
 0x26b   : > { %v2756_v22 = vadd.f32 1.0, %v4067_v59  ;;  %v2981_v62 = vsel %vm2978_vm10, %v2980_v33, %v2976_v23  ;;  %vm2989_vm11 = vweird.f32 %v4065_v52 }
 0x26c   : > { %v2985_v32 = vsub.f32 1.0, %v2984_v4  ;;  %v2594_v43 = vadd.f32 %v2532_v34, %v2316_v24  ;;  %v3266_v0 = vmul.f32 %v2981_v62, %v5495_v45  ;;  %v2535_v40 = vpop.f32.mrf.mxu0  ;;  %vm2990_vm13 = vmor %vm2988_vm12, %vm2989_vm11 }
 0x26d   : > { %4070 = vrcp.f32 %v2756_v22  ;;  %v3009_v1 = vand.u32 2147483648, %v2756_v22  ;;  %v3007_v61 = vand.u32 2147483647, %v2756_v22  ;;  %vm3003_vm1 = vweird.f32 %v2756_v22 }
 0x26e   : > { %v2986_v28 = vmul.f32 %v4065_v52, %v2985_v32  ;;  %v5563_v5 = vadd.f32 %v5535_v9, %v2594_v43  ;;  %3298 = vst [vmem:[%s5263_s10 + $0x68] sm:$0xff] %v3266_v0 }
 0x26f   : > { %v1979_v57 = vpop.f32.mrf.mxu2  ;;  %v3010_v59 = vor.u32 1.1754944e-38, %v3009_v1  ;;  %vm3008_vm3 = vcmp.eq.f32.partialorder %v3007_v61, 8.507059e+37 }
 0x270   : > { %v2987_v18 = vadd.f32 %v4065_v52, %v2986_v28  ;;  %v3930_v45 = vmul.f32 -1.442695, %v5563_v5  ;;  %v2039_v20 = vadd.f32 %v1979_v57, %v1760_v25  ;;  %v4069_v54 = vpop.eup %4068  ;;  %v1703_v8 = vpop.f32.mrf.mxu1 }
 0x271   : > { %v2257_v31 = vpop.f32.mrf.mxu3  ;;  %v5568_v60 = vadd.f32 1.0, %v4069_v54  ;;  %v1761_v34 = vadd.f32 %v1703_v8, %v5044_v10 }
 0x272   : > { %v2991_v47 = vsel %vm2990_vm13, %v4065_v52, %v2987_v18  ;;  %4072 = vpow2.f32 %v3930_v45  ;;  %v2317_v16 = vadd.f32 %v2257_v31, %v2039_v20 }
 0x273   : > { %v4071_v63 = vpop.eup %4070  ;;  %v2996_v27 = vsel %vm2993_vm14, %v2995_v38, %v2991_v47  ;;  %4074 = vrcp.f32 %v5568_v60  ;;  %v3024_v0 = vand.u32 2147483648, %v5568_v60  ;;  %v3022_v6 = vand.u32 2147483647, %v5568_v60 }
 0x274   : > { %v3267_v14 = vmul.f32 %v2996_v27, %v5517_v11  ;;  %v2999_v55 = vmul.f32 %v4071_v63, %v2756_v22  ;;  %v2595_v46 = vadd.f32 %v2535_v40, %v2317_v16  ;;  %v2538_v35 = vpop.f32.mrf.mxu0  ;;  %vm3004_vm15 = vweird.f32 %v4071_v63 }
 0x275   : > { %vm3005_vm2 = vmor %vm3003_vm1, %vm3004_vm15  ;;  %vm3018_vm4 = vweird.f32 %v5568_v60  ;;  %vm3023_vm6 = vcmp.eq.f32.partialorder %v3022_v6, 8.507059e+37 }
 0x276   : > { %3299 = vst [vmem:[%s5263_s10 + $0x70] sm:$0xff] %v3267_v14  ;;  %v3000_v37 = vsub.f32 1.0, %v2999_v55  ;;  %v5575_v44 = vadd.f32 %v5535_v9, %v2595_v46 }
 0x277   : > { %v1982_v29 = vpop.f32.mrf.mxu2 }
 0x278   : > { %v4073_v39 = vpop.eup %4072  ;;  %v3001_v41 = vmul.f32 %v4071_v63, %v3000_v37  ;;  %v2040_v58 = vadd.f32 %v1982_v29, %v1761_v34  ;;  %v3931_v52 = vmul.f32 -1.442695, %v5575_v44  ;;  %v1706_v50 = vpop.f32.mrf.mxu1 }
 0x279   : > { %v5577_v11 = vadd.f32 1.0, %v4073_v39  ;;  %v2260_v30 = vpop.f32.mrf.mxu3  ;;  %v4075_v7 = vpop.eup %4074  ;;  %v1762_v22 = vadd.f32 %v1706_v50, %v5055_v42  ;;  %v3025_v42 = vor.u32 1.1754944e-38, %v3024_v0 }
 0x27a   : > { %v3002_v53 = vadd.f32 %v4071_v63, %v3001_v41  ;;  %v2318_v10 = vadd.f32 %v2260_v30, %v2040_v58  ;;  %v3014_v33 = vmul.f32 %v4075_v7, %v5568_v60  ;;  %vm3019_vm0 = vweird.f32 %v4075_v7 }
 0x27b   : > { %4076 = vrcp.f32 %v5577_v11  ;;  %vm3020_vm5 = vmor %vm3018_vm4, %vm3019_vm0  ;;  %v3037_v14 = vand.u32 2147483647, %v5577_v11  ;;  %v3039_v55 = vand.u32 2147483648, %v5577_v11  ;;  %vm3033_vm8 = vweird.f32 %v5577_v11 }
 0x27c   : > { %v3006_v4 = vsel %vm3005_vm2, %v4071_v63, %v3002_v53  ;;  %4078 = vpow2.f32 %v3931_v52  ;;  %v3015_v23 = vsub.f32 1.0, %v3014_v33  ;;  %v2596_v62 = vadd.f32 %v2538_v35, %v2318_v10  ;;  %v2541_v32 = vpop.f32.mrf.mxu0 }
 0x27d   : > { %v3011_v24 = vsel %vm3008_vm3, %v3010_v59, %v3006_v4  ;;  %v3040_v61 = vor.u32 1.1754944e-38, %v3039_v55  ;;  %vm3038_vm10 = vcmp.eq.f32.partialorder %v3037_v14, 8.507059e+37 }
 0x27e   : > { %v3268_v43 = vmul.f32 %v3011_v24, %v5538_v36  ;;  %v3016_v48 = vmul.f32 %v4075_v7, %v3015_v23  ;;  %v5587_v40 = vadd.f32 %v5535_v9, %v2596_v62 }
 0x27f   : > { %v1985_v28 = vpop.f32.mrf.mxu2 }
 0x280   : > { %3300 = vst [vmem:[%s5263_s10 + $0x78] sm:$0xff] %v3268_v43  ;;  %v2041_v25 = vadd.f32 %v1985_v28, %v1762_v22  ;;  %v3017_v18 = vadd.f32 %v4075_v7, %v3016_v48  ;;  %v3932_v36 = vmul.f32 -1.442695, %v5587_v40  ;;  %v1709_v45 = vpop.f32.mrf.mxu1 }
 0x281   : > { %v4077_v57 = vpop.eup %4076  ;;  %v2263_v20 = vpop.f32.mrf.mxu3  ;;  %v1763_v37 = vadd.f32 %v1709_v45, %v5066_v49 }
 0x282   : > { %v4079_v54 = vpop.eup %4078  ;;  %v3029_v38 = vmul.f32 %v4077_v57, %v5577_v11  ;;  %v2319_v8 = vadd.f32 %v2263_v20, %v2041_v25  ;;  %v3021_v31 = vsel %vm3020_vm5, %v4075_v7, %v3017_v18  ;;  %4080 = vpow2.f32 %v3932_v36 }
 0x283   : > { %v2759_v47 = vadd.f32 1.0, %v4079_v54  ;;  %v3026_v63 = vsel %vm3023_vm6, %v3025_v42, %v3021_v31  ;;  %vm3034_vm7 = vweird.f32 %v4077_v57 }
 0x284   : > { %v3030_v27 = vsub.f32 1.0, %v3029_v38  ;;  %v2597_v16 = vadd.f32 %v2541_v32, %v2319_v8  ;;  %v3269_v60 = vmul.f32 %v3026_v63, %v5552_v26  ;;  %v2544_v46 = vpop.f32.mrf.mxu0  ;;  %vm3035_vm9 = vmor %vm3033_vm8, %vm3034_vm7 }
 0x285   : > { %4082 = vrcp.f32 %v2759_v47  ;;  %v3054_v23 = vand.u32 2147483648, %v2759_v47  ;;  %v3052_v22 = vand.u32 2147483647, %v2759_v47  ;;  %vm3048_vm12 = vweird.f32 %v2759_v47 }
 0x286   : > { %v3031_v35 = vmul.f32 %v4077_v57, %v3030_v27  ;;  %v5598_v34 = vadd.f32 %v5535_v9, %v2597_v16  ;;  %3301 = vst [vmem:[%s5263_s10 + $0x80] sm:$0xff] %v3269_v60 }
 0x287   : > { %v1988_v1 = vpop.f32.mrf.mxu2  ;;  %v3055_v36 = vor.u32 1.1754944e-38, %v3054_v23  ;;  %vm3053_vm14 = vcmp.eq.f32.partialorder %v3052_v22, 8.507059e+37 }
 0x288   : > { %v3032_v29 = vadd.f32 %v4077_v57, %v3031_v35  ;;  %v3933_v26 = vmul.f32 -1.442695, %v5598_v34  ;;  %v2042_v39 = vadd.f32 %v1988_v1, %v1763_v37  ;;  %v4081_v41 = vpop.eup %4080  ;;  %v1712_v58 = vpop.f32.mrf.mxu1 }
 0x289   : > { %v2266_v52 = vpop.f32.mrf.mxu3  ;;  %v5603_v49 = vadd.f32 1.0, %v4081_v41  ;;  %v1764_v24 = vadd.f32 %v1712_v58, %v5077_v3 }
 0x28a   : > { %v3036_v50 = vsel %vm3035_vm9, %v4077_v57, %v3032_v29  ;;  %4084 = vpow2.f32 %v3933_v26  ;;  %v2320_v53 = vadd.f32 %v2266_v52, %v2042_v39 }
 0x28b   : > { %v4083_v30 = vpop.eup %4082  ;;  %v3041_v7 = vsel %vm3038_vm10, %v3040_v61, %v3036_v50  ;;  %4086 = vrcp.f32 %v5603_v49  ;;  %v3069_v63 = vand.u32 2147483648, %v5603_v49  ;;  %v3067_v16 = vand.u32 2147483647, %v5603_v49 }
 0x28c   : > { %v3270_v10 = vmul.f32 %v3041_v7, %v5563_v5  ;;  %v3044_v11 = vmul.f32 %v4083_v30, %v2759_v47  ;;  %v2598_v59 = vadd.f32 %v2544_v46, %v2320_v53  ;;  %v2547_v33 = vpop.f32.mrf.mxu0  ;;  %vm3049_vm11 = vweird.f32 %v4083_v30 }
 0x28d   : > { %vm3050_vm13 = vmor %vm3048_vm12, %vm3049_vm11  ;;  %vm3063_vm1 = vweird.f32 %v5603_v49  ;;  %vm3068_vm3 = vcmp.eq.f32.partialorder %v3067_v16, 8.507059e+37 }
 0x28e   : > { %3302 = vst [vmem:[%s5263_s10 + $0x88] sm:$0xff] %v3270_v10  ;;  %v3045_v4 = vsub.f32 1.0, %v3044_v11  ;;  %v5610_v62 = vadd.f32 %v5535_v9, %v2598_v59 }
 0x28f   : > { %v1991_v32 = vpop.f32.mrf.mxu2 }
 0x290   : > { %v4085_v43 = vpop.eup %4084  ;;  %v3046_v0 = vmul.f32 %v4083_v30, %v3045_v4  ;;  %v2043_v48 = vadd.f32 %v1991_v32, %v1764_v24  ;;  %v3934_v6 = vmul.f32 -1.442695, %v5610_v62  ;;  %v1715_v28 = vpop.f32.mrf.mxu1 }
 0x291   : > { %v5612_v5 = vadd.f32 1.0, %v4085_v43  ;;  %v2269_v25 = vpop.f32.mrf.mxu3  ;;  %v4087_v57 = vpop.eup %4086  ;;  %v1765_v47 = vadd.f32 %v1715_v28, %v5088_v19  ;;  %v3070_v19 = vor.u32 1.1754944e-38, %v3069_v63 }
 0x292   : > { %v3047_v18 = vadd.f32 %v4083_v30, %v3046_v0  ;;  %v2321_v3 = vadd.f32 %v2269_v25, %v2043_v48  ;;  %v3059_v45 = vmul.f32 %v4087_v57, %v5603_v49  ;;  %vm3064_vm15 = vweird.f32 %v4087_v57 }
 0x293   : > { %4088 = vrcp.f32 %v5612_v5  ;;  %vm3065_vm2 = vmor %vm3063_vm1, %vm3064_vm15  ;;  %v3084_v7 = vand.u32 2147483648, %v5612_v5  ;;  %vm3078_vm4 = vweird.f32 %v5612_v5 }
 0x294   : > { %v3051_v20 = vsel %vm3050_vm13, %v4083_v30, %v3047_v18  ;;  %4090 = vpow2.f32 %v3934_v6  ;;  %v3060_v42 = vsub.f32 1.0, %v3059_v45  ;;  %v2599_v38 = vadd.f32 %v2547_v33, %v2321_v3  ;;  %v2550_v8 = vpop.f32.mrf.mxu0 }
 0x295   : > { %v3056_v54 = vsel %vm3053_vm14, %v3055_v36, %v3051_v20  ;;  %v3082_v30 = vand.u32 2147483647, %v5612_v5  ;;  %v3085_v32 = vor.u32 1.1754944e-38, %v3084_v7 }
 0x296   : > { %v3271_v31 = vmul.f32 %v3056_v54, %v5575_v44  ;;  %v3061_v27 = vmul.f32 %v4087_v57, %v3060_v42  ;;  %v5622_v60 = vadd.f32 %v5535_v9, %v2599_v38 }
 0x297   : > { %v1994_v14 = vpop.f32.mrf.mxu2  ;;  %vm3083_vm6 = vcmp.eq.f32.partialorder %v3082_v30, 8.507059e+37 }
 0x298   : > { %3303 = vst [vmem:[%s5263_s10 + $0x90] sm:$0xff] %v3271_v31  ;;  %v2044_v55 = vadd.f32 %v1994_v14, %v1765_v47  ;;  %v3062_v35 = vadd.f32 %v4087_v57, %v3061_v27  ;;  %v3935_v44 = vmul.f32 -1.442695, %v5622_v60  ;;  %v1718_v37 = vpop.f32.mrf.mxu1 }
 0x299   : > { %v4089_v46 = vpop.eup %4088  ;;  %v2272_v1 = vpop.f32.mrf.mxu3  ;;  %v1766_v11 = vadd.f32 %v1718_v37, %v5099_v17 }
 0x29a   : > { %v4091_v29 = vpop.eup %4090  ;;  %v3074_v26 = vmul.f32 %v4089_v46, %v5612_v5  ;;  %v2322_v39 = vadd.f32 %v2272_v1, %v2044_v55  ;;  %v3066_v41 = vsel %vm3065_vm2, %v4087_v57, %v3062_v35  ;;  %4092 = vpow2.f32 %v3935_v44 }
 0x29b   : > { %v2762_v61 = vadd.f32 1.0, %v4091_v29  ;;  %v3071_v58 = vsel %vm3068_vm3, %v3070_v19, %v3066_v41  ;;  %vm3079_vm0 = vweird.f32 %v4089_v46 }
 0x29c   : > { %v3075_v52 = vsub.f32 1.0, %v3074_v26  ;;  %v2600_v50 = vadd.f32 %v2550_v8, %v2322_v39  ;;  %v3272_v49 = vmul.f32 %v3071_v58, %v5587_v40  ;;  %v2553_v53 = vpop.f32.mrf.mxu0  ;;  %vm3080_vm5 = vmor %vm3078_vm4, %vm3079_vm0 }
 0x29d   : > { %4094 = vrcp.f32 %v2762_v61  ;;  %v3099_v45 = vand.u32 2147483648, %v2762_v61  ;;  %v3097_v8 = vand.u32 2147483647, %v2762_v61  ;;  %vm3093_vm8 = vweird.f32 %v2762_v61 }
 0x29e   : > { %v3076_v10 = vmul.f32 %v4089_v46, %v3075_v52  ;;  %v5633_v59 = vadd.f32 %v5535_v9, %v2600_v50  ;;  %3304 = vst [vmem:[%s5263_s10 + $0x98] sm:$0xff] %v3272_v49 }
 0x29f   : > { %v1997_v33 = vpop.f32.mrf.mxu2  ;;  %v3100_v55 = vor.u32 1.1754944e-38, %v3099_v45  ;;  %vm3098_vm10 = vcmp.eq.f32.partialorder %v3097_v8, 8.507059e+37 }
 0x2a0   : > { %v3077_v4 = vadd.f32 %v4089_v46, %v3076_v10  ;;  %v3936_v40 = vmul.f32 -1.442695, %v5633_v59  ;;  %v2045_v24 = vadd.f32 %v1997_v33, %v1766_v11  ;;  %v4093_v23 = vpop.eup %4092  ;;  %v1721_v43 = vpop.f32.mrf.mxu1 }
 0x2a1   : > { %v2275_v0 = vpop.f32.mrf.mxu3  ;;  %v5638_v17 = vadd.f32 1.0, %v4093_v23  ;;  %v1767_v36 = vadd.f32 %v1721_v43, %v5110_v51 }
 0x2a2   : > { %v3081_v22 = vsel %vm3080_vm5, %v4089_v46, %v3077_v4  ;;  %4096 = vpow2.f32 %v3936_v40  ;;  %v2323_v28 = vadd.f32 %v2275_v0, %v2045_v24 }
 0x2a3   : > { %v4095_v48 = vpop.eup %4094  ;;  %v3086_v6 = vsel %vm3083_vm6, %v3085_v32, %v3081_v22  ;;  %4098 = vrcp.f32 %v5638_v17  ;;  %v3114_v26 = vand.u32 2147483648, %v5638_v17  ;;  %vm3108_vm12 = vweird.f32 %v5638_v17 }
 0x2a4   : > { %v3273_v25 = vmul.f32 %v3086_v6, %v5598_v34  ;;  %v3089_v5 = vmul.f32 %v4095_v48, %v2762_v61  ;;  %v2601_v57 = vadd.f32 %v2553_v53, %v2323_v28  ;;  %v2556_v18 = vpop.f32.mrf.mxu0  ;;  %vm3094_vm7 = vweird.f32 %v4095_v48 }
 0x2a5   : > { %vm3095_vm9 = vmor %vm3093_vm8, %vm3094_vm7  ;;  %v3112_v61 = vand.u32 2147483647, %v5638_v17 }
 0x2a6   : > { %3305 = vst [vmem:[%s5263_s10 + $0xa0] sm:$0xff] %v3273_v25  ;;  %v3090_v3 = vsub.f32 1.0, %v3089_v5  ;;  %v5645_v20 = vadd.f32 %v5535_v9, %v2601_v57 }
 0x2a7   : > { %v2000_v54 = vpop.f32.mrf.mxu2  ;;  %vm3113_vm14 = vcmp.eq.f32.partialorder %v3112_v61, 8.507059e+37 }
 0x2a8   : > { %v4097_v42 = vpop.eup %4096  ;;  %v3091_v38 = vmul.f32 %v4095_v48, %v3090_v3  ;;  %v2046_v31 = vadd.f32 %v2000_v54, %v1767_v36  ;;  %v3937_v63 = vmul.f32 -1.442695, %v5645_v20  ;;  %v1724_v47 = vpop.f32.mrf.mxu1 }
 0x2a9   : > { %v5647_v34 = vadd.f32 1.0, %v4097_v42  ;;  %v2278_v27 = vpop.f32.mrf.mxu3  ;;  %v4099_v16 = vpop.eup %4098  ;;  %v1768_v39 = vadd.f32 %v1724_v47, %v5121_v12  ;;  %v3115_v12 = vor.u32 1.1754944e-38, %v3114_v26 }
 0x2aa   : > { %v3092_v14 = vadd.f32 %v4095_v48, %v3091_v38  ;;  %v2324_v51 = vadd.f32 %v2278_v27, %v2046_v31  ;;  %v3104_v46 = vmul.f32 %v4099_v16, %v5638_v17  ;;  %vm3109_vm11 = vweird.f32 %v4099_v16 }
 0x2ab   : > { %4100 = vrcp.f32 %v5647_v34  ;;  %vm3110_vm13 = vmor %vm3108_vm12, %vm3109_vm11  ;;  %v3127_v0 = vand.u32 2147483647, %v5647_v34  ;;  %v3129_v22 = vand.u32 2147483648, %v5647_v34  ;;  %vm3123_vm1 = vweird.f32 %v5647_v34 }
 0x2ac   : > { %v3096_v35 = vsel %vm3095_vm9, %v4095_v48, %v3092_v14  ;;  %4102 = vpow2.f32 %v3937_v63  ;;  %v3105_v37 = vsub.f32 1.0, %v3104_v46  ;;  %v2602_v1 = vadd.f32 %v2556_v18, %v2324_v51  ;;  %v2559_v29 = vpop.f32.mrf.mxu0 }
 0x2ad   : > { %v3101_v44 = vsel %vm3098_vm10, %v3100_v55, %v3096_v35  ;;  %v3130_v3 = vor.u32 1.1754944e-38, %v3129_v22  ;;  %vm3128_vm3 = vcmp.eq.f32.partialorder %v3127_v0, 8.507059e+37 }
 0x2ae   : > { %v3274_v19 = vmul.f32 %v3101_v44, %v5610_v62  ;;  %v3106_v41 = vmul.f32 %v4099_v16, %v3105_v37  ;;  %v5657_v58 = vadd.f32 %v5535_v9, %v2602_v1 }
 0x2af   : > { %v2003_v52 = vpop.f32.mrf.mxu2 }
 0x2b0   : > { %3306 = vst [vmem:[%s5263_s10 + $0xa8] sm:$0xff] %v3274_v19  ;;  %v2047_v50 = vadd.f32 %v2003_v52, %v1768_v39  ;;  %v3107_v30 = vadd.f32 %v4099_v16, %v3106_v41  ;;  %v3938_v62 = vmul.f32 -1.442695, %v5657_v58  ;;  %v1727_v7 = vpop.f32.mrf.mxu1 }
 0x2b1   : > { %v4101_v49 = vpop.eup %4100  ;;  %v2281_v53 = vpop.f32.mrf.mxu3  ;;  %v1769_v6 = vadd.f32 %v1727_v7, %v5132_v15 }
 0x2b2   : > { %v4103_v10 = vpop.eup %4102  ;;  %v3119_v11 = vmul.f32 %v4101_v49, %v5647_v34  ;;  %v2325_v33 = vadd.f32 %v2281_v53, %v2047_v50  ;;  %v3111_v4 = vsel %vm3110_vm13, %v4099_v16, %v3107_v30  ;;  %4104 = vpow2.f32 %v3938_v62 }
 0x2b3   : > { %v2765_v40 = vadd.f32 1.0, %v4103_v10  ;;  %v3116_v24 = vsel %vm3113_vm14, %v3115_v12, %v3111_v4  ;;  %vm3124_vm15 = vweird.f32 %v4101_v49 }
 0x2b4   : > { %v3120_v23 = vsub.f32 1.0, %v3119_v11  ;;  %v2603_v32 = vadd.f32 %v2559_v29, %v2325_v33  ;;  %v3275_v43 = vmul.f32 %v3116_v24, %v5622_v60  ;;  %v2562_v17 = vpop.f32.mrf.mxu0  ;;  %vm3125_vm2 = vmor %vm3123_vm1, %vm3124_vm15 }
 0x2b5   : > { %4106 = vrcp.f32 %v2765_v40  ;;  %v3144_v14 = vand.u32 2147483648, %v2765_v40  ;;  %v3142_v44 = vand.u32 2147483647, %v2765_v40  ;;  %vm3138_vm4 = vweird.f32 %v2765_v40 }
 0x2b6   : > { %v3121_v48 = vmul.f32 %v4101_v49, %v3120_v23  ;;  %v5668_v28 = vadd.f32 %v5535_v9, %v2603_v32  ;;  %3307 = vst [vmem:[%s5263_s10 + $0xb0] sm:$0xff] %v3275_v43 }
 0x2b7   : > { %v2006_v25 = vpop.f32.mrf.mxu2  ;;  %v3145_v41 = vor.u32 1.1754944e-38, %v3144_v14  ;;  %vm3143_vm6 = vcmp.eq.f32.partialorder %v3142_v44, 8.507059e+37 }
 0x2b8   : > { %v3122_v5 = vadd.f32 %v4101_v49, %v3121_v48  ;;  %v3939_v60 = vmul.f32 -1.442695, %v5668_v28  ;;  %v2048_v57 = vadd.f32 %v2006_v25, %v1769_v6  ;;  %v4105_v18 = vpop.eup %4104  ;;  %v1730_v36 = vpop.f32.mrf.mxu1 }
 0x2b9   : > { %v2284_v45 = vpop.f32.mrf.mxu3  ;;  %v5673_v15 = vadd.f32 1.0, %v4105_v18  ;;  %v1770_v16 = vadd.f32 %v1730_v36, %v5143_v56 }
 0x2ba   : > { %v3126_v54 = vsel %vm3125_vm2, %v4101_v49, %v3122_v5  ;;  %4108 = vpow2.f32 %v3939_v60  ;;  %v2326_v8 = vadd.f32 %v2284_v45, %v2048_v57 }
 0x2bb   : > { %v4107_v42 = vpop.eup %4106  ;;  %v3131_v38 = vsel %vm3128_vm3, %v3130_v3, %v3126_v54  ;;  %4110 = vrcp.f32 %v5673_v15  ;;  %v3159_v7 = vand.u32 2147483648, %v5673_v15  ;;  %v3157_v11 = vand.u32 2147483647, %v5673_v15 }
 0x2bc   : > { %v3276_v31 = vmul.f32 %v3131_v38, %v5633_v59  ;;  %v3134_v34 = vmul.f32 %v4107_v42, %v2765_v40  ;;  %v2604_v63 = vadd.f32 %v2562_v17, %v2326_v8  ;;  %v2565_v47 = vpop.f32.mrf.mxu0  ;;  %vm3139_vm0 = vweird.f32 %v4107_v42 }
 0x2bd   : > { %vm3140_vm5 = vmor %vm3138_vm4, %vm3139_vm0  ;;  %vm3153_vm8 = vweird.f32 %v5673_v15  ;;  %v3160_v0 = vor.u32 1.1754944e-38, %v3159_v7  ;;  %vm3158_vm10 = vcmp.eq.f32.partialorder %v3157_v11, 8.507059e+37 }
 0x2be   : > { %3308 = vst [vmem:[%s5263_s10 + $0xb8] sm:$0xff] %v3276_v31  ;;  %v3135_v27 = vsub.f32 1.0, %v3134_v34  ;;  %v5680_v51 = vadd.f32 %v5535_v9, %v2604_v63 }
 0x2bf   : > { %v2009_v55 = vpop.f32.mrf.mxu2 }
 0x2c0   : > { %v4109_v46 = vpop.eup %4108  ;;  %v3136_v35 = vmul.f32 %v4107_v42, %v3135_v27  ;;  %v2049_v37 = vadd.f32 %v2009_v55, %v1770_v16  ;;  %v3940_v1 = vmul.f32 -1.442695, %v5680_v51  ;;  %v1733_v29 = vpop.f32.mrf.mxu1 }
 0x2c1   : > { %v5682_v59 = vadd.f32 1.0, %v4109_v46  ;;  %v2287_v19 = vpop.f32.mrf.mxu3  ;;  %v4111_v26 = vpop.eup %4110  ;;  %v1771_v53 = vadd.f32 %v1733_v29, %v5154_v13 }
 0x2c2   : > { %v3137_v39 = vadd.f32 %v4107_v42, %v3136_v35  ;;  %v2327_v56 = vadd.f32 %v2287_v19, %v2049_v37  ;;  %v3149_v61 = vmul.f32 %v4111_v26, %v5673_v15  ;;  %vm3154_vm7 = vweird.f32 %v4111_v26 }
 0x2c3   : > { %4112 = vrcp.f32 %v5682_v59  ;;  %vm3155_vm9 = vmor %vm3153_vm8, %vm3154_vm7  ;;  %v3172_v18 = vand.u32 2147483647, %v5682_v59  ;;  %v3174_v3 = vand.u32 2147483648, %v5682_v59  ;;  %vm3168_vm12 = vweird.f32 %v5682_v59 }
 0x2c4   : > { %v3141_v52 = vsel %vm3140_vm5, %v4107_v42, %v3137_v39  ;;  %4114 = vpow2.f32 %v3940_v1  ;;  %v3150_v49 = vsub.f32 1.0, %v3149_v61  ;;  %v2605_v30 = vadd.f32 %v2565_v47, %v2327_v56  ;;  %v2568_v10 = vpop.f32.mrf.mxu0 }
 0x2c5   : > { %v3146_v50 = vsel %vm3143_vm6, %v3145_v41, %v3141_v52  ;;  %v3175_v34 = vor.u32 1.1754944e-38, %v3174_v3  ;;  %vm3173_vm14 = vcmp.eq.f32.partialorder %v3172_v18, 8.507059e+37 }
 0x2c6   : > { %v3277_v62 = vmul.f32 %v3146_v50, %v5645_v20  ;;  %v3151_v12 = vmul.f32 %v4111_v26, %v3150_v49  ;;  %v5692_v33 = vadd.f32 %v5535_v9, %v2605_v30 }
 0x2c7   : > { %v2012_v4 = vpop.f32.mrf.mxu2 }
 0x2c8   : > { %3309 = vst [vmem:[%s5263_s10 + $0xc0] sm:$0xff] %v3277_v62  ;;  %v2050_v40 = vadd.f32 %v2012_v4, %v1771_v53  ;;  %v3152_v23 = vadd.f32 %v4111_v26, %v3151_v12  ;;  %v3941_v20 = vmul.f32 -1.442695, %v5692_v33  ;;  %v1736_v32 = vpop.f32.mrf.mxu1 }
 0x2c9   : > { %v4113_v24 = vpop.eup %4112  ;;  %v2290_v43 = vpop.f32.mrf.mxu3  ;;  %v1772_v45 = vadd.f32 %v1736_v32, %v5165_v21 }
 0x2ca   : > { %v4115_v13 = vpop.eup %4114  ;;  %v3164_v22 = vmul.f32 %v4113_v24, %v5682_v59  ;;  %v2328_v17 = vadd.f32 %v2290_v43, %v2050_v40  ;;  %v3156_v48 = vsel %vm3155_vm9, %v4111_v26, %v3152_v23  ;;  %4116 = vpow2.f32 %v3941_v20 }
 0x2cb   : > { %v2768_v6 = vadd.f32 1.0, %v4115_v13  ;;  %v3161_v25 = vsel %vm3158_vm10, %v3160_v0, %v3156_v48  ;;  %vm3169_vm11 = vweird.f32 %v4113_v24 }
 0x2cc   : > { %v3165_v5 = vsub.f32 1.0, %v3164_v22  ;;  %v2606_v60 = vadd.f32 %v2568_v10, %v2328_v17  ;;  %v3278_v57 = vmul.f32 %v3161_v25, %v5657_v58  ;;  %v2571_v8 = vpop.f32.mrf.mxu0  ;;  %vm3170_vm13 = vmor %vm3168_vm12, %vm3169_vm11 }
 0x2cd   : > { %4118 = vrcp.f32 %v2768_v6  ;;  %v3189_v1 = vand.u32 2147483648, %v2768_v6  ;;  %v3187_v56 = vand.u32 2147483647, %v2768_v6  ;;  %vm3183_vm1 = vweird.f32 %v2768_v6 }
 0x2ce   : > { %v3166_v36 = vmul.f32 %v4113_v24, %v3165_v5  ;;  %v5703_v54 = vadd.f32 %v5535_v9, %v2606_v60  ;;  %3310 = vst [vmem:[%s5263_s10 + $0xc8] sm:$0xff] %v3278_v57 }
 0x2cf   : > { %v2015_v15 = vpop.f32.mrf.mxu2  ;;  %vm3188_vm3 = vcmp.eq.f32.partialorder %v3187_v56, 8.507059e+37 }
 0x2d0   : > { %v3167_v42 = vadd.f32 %v4113_v24, %v3166_v36  ;;  %v3942_v38 = vmul.f32 -1.442695, %v5703_v54  ;;  %v2051_v58 = vadd.f32 %v2015_v15, %v1772_v45  ;;  %v4117_v31 = vpop.eup %4116  ;;  %v1739_v14 = vpop.f32.mrf.mxu1 }
 0x2d1   : > { %v2293_v63 = vpop.f32.mrf.mxu3  ;;  %v2769_v21 = vadd.f32 1.0, %v4117_v31  ;;  %v1773_v59 = vadd.f32 %v1739_v14, %v5176_v2  ;;  %v3190_v2 = vor.u32 1.1754944e-38, %v3189_v1 }
 0x2d2   : > { %v3171_v47 = vsel %vm3170_vm13, %v4113_v24, %v3167_v42  ;;  %4120 = vpow2.f32 %v3942_v38  ;;  %v2329_v55 = vadd.f32 %v2293_v63, %v2051_v58 }
 0x2d3   : > { %v4119_v27 = vpop.eup %4118  ;;  %v3176_v16 = vsel %vm3173_vm14, %v3175_v34, %v3171_v47  ;;  %4122 = vrcp.f32 %v2769_v21  ;;  %v3204_v40 = vand.u32 2147483648, %v2769_v21  ;;  %v3202_v23 = vand.u32 2147483647, %v2769_v21 }
 0x2d4   : > { %v3279_v46 = vmul.f32 %v3176_v16, %v5668_v28  ;;  %v3179_v35 = vmul.f32 %v4119_v27, %v2768_v6  ;;  %v2607_v44 = vadd.f32 %v2571_v8, %v2329_v55  ;;  %vm3184_vm15 = vweird.f32 %v4119_v27  ;;  %v2574_v62 = vpop.f32.mrf.mxu0 }
 0x2d5   : > { %vm3185_vm2 = vmor %vm3183_vm1, %vm3184_vm15  ;;  %vm3198_vm4 = vweird.f32 %v2769_v21  ;;  %v3205_v22 = vor.u32 1.1754944e-38, %v3204_v40  ;;  %vm3203_vm6 = vcmp.eq.f32.partialorder %v3202_v23, 8.507059e+37 }
 0x2d6   : > { %3311 = vst [vmem:[%s5263_s10 + $0xd0] sm:$0xff] %v3279_v46  ;;  %v3180_v37 = vsub.f32 1.0, %v3179_v35  ;;  %v5712_v29 = vadd.f32 %v5535_v9, %v2607_v44 }
 0x2d7   : > { %v2018_v19 = vpop.f32.mrf.mxu2 }
 0x2d8   : > { %v4121_v26 = vpop.eup %4120  ;;  %v3181_v39 = vmul.f32 %v4119_v27, %v3180_v37  ;;  %v2052_v41 = vadd.f32 %v2018_v19, %v1773_v59  ;;  %v3943_v28 = vmul.f32 -1.442695, %v5712_v29 }
 0x2d9   : > { %v2770_v61 = vadd.f32 1.0, %v4121_v26  ;;  %v2296_v52 = vpop.f32.mrf.mxu3  ;;  %v4123_v50 = vpop.eup %4122 }
 0x2da   : > { %v3182_v49 = vadd.f32 %v4119_v27, %v3181_v39  ;;  %v2330_v30 = vadd.f32 %v2296_v52, %v2052_v41  ;;  %v3194_v7 = vmul.f32 %v4123_v50, %v2769_v21  ;;  %vm3199_vm0 = vweird.f32 %v4123_v50 }
 0x2db   : > { %4124 = vrcp.f32 %v2770_v61  ;;  %vm3200_vm5 = vmor %vm3198_vm4, %vm3199_vm0  ;;  %v3219_v5 = vand.u32 2147483648, %v2770_v61  ;;  %v3217_v57 = vand.u32 2147483647, %v2770_v61  ;;  %vm3213_vm8 = vweird.f32 %v2770_v61 }
 0x2dc   : > { %v3186_v53 = vsel %vm3185_vm2, %v4119_v27, %v3182_v49  ;;  %4126 = vpow2.f32 %v3943_v28  ;;  %v3195_v12 = vsub.f32 1.0, %v3194_v7  ;;  %v2608_v11 = vadd.f32 %v2574_v62, %v2330_v30 }
 0x2dd   : > { %v3191_v10 = vsel %vm3188_vm3, %v3190_v2, %v3186_v53  ;;  %v3220_v36 = vor.u32 1.1754944e-38, %v3219_v5  ;;  %vm3218_vm10 = vcmp.eq.f32.partialorder %v3217_v57, 8.507059e+37 }
 0x2de   : > { %v3280_v4 = vmul.f32 %v3191_v10, %v5680_v51  ;;  %v3196_v24 = vmul.f32 %v4123_v50, %v3195_v12  ;;  %v5717_v20 = vadd.f32 %v5535_v9, %v2608_v11 }
 0x2e0   : > { %3312 = vst [vmem:[%s5263_s10 + $0xd8] sm:$0xff] %v3280_v4  ;;  %v3197_v43 = vadd.f32 %v4123_v50, %v3196_v24  ;;  %v3944_v13 = vmul.f32 -1.442695, %v5717_v20 }
 0x2e1   : > { %v4125_v32 = vpop.eup %4124 }
 0x2e2   : > { %v4127_v0 = vpop.eup %4126  ;;  %v3209_v17 = vmul.f32 %v4125_v32, %v2770_v61  ;;  %v3201_v48 = vsel %vm3200_vm5, %v4123_v50, %v3197_v43  ;;  %4128 = vpow2.f32 %v3944_v13  ;;  %vm3214_vm7 = vweird.f32 %v4125_v32 }
 0x2e3   : > { %v2771_v51 = vadd.f32 1.0, %v4127_v0  ;;  %v3206_v6 = vsel %vm3203_vm6, %v3205_v22, %v3201_v48  ;;  %vm3215_vm9 = vmor %vm3213_vm8, %vm3214_vm7 }
 0x2e4   : > { %v3210_v25 = vsub.f32 1.0, %v3209_v17  ;;  %v3281_v9 = vmul.f32 %v3206_v6, %v5692_v33 }
 0x2e5   : > { %4130 = vrcp.f32 %v2771_v51  ;;  %v3234_v31 = vand.u32 2147483648, %v2771_v51  ;;  %v3232_v63 = vand.u32 2147483647, %v2771_v51  ;;  %vm3228_vm12 = vweird.f32 %v2771_v51 }
 0x2e6   : > { %v3211_v60 = vmul.f32 %v4125_v32, %v3210_v25  ;;  %3313 = vst [vmem:[%s5263_s10 + $0xe0] sm:$0xff] %v3281_v9 }
 0x2e7   : > { %v3235_v27 = vor.u32 1.1754944e-38, %v3234_v31  ;;  %vm3233_vm14 = vcmp.eq.f32.partialorder %v3232_v63, 8.507059e+37 }
 0x2e8   : > { %v3212_v18 = vadd.f32 %v4125_v32, %v3211_v60  ;;  %v4129_v3 = vpop.eup %4128 }
 0x2e9   : > { %v2772_v15 = vadd.f32 1.0, %v4129_v3 }
 0x2ea   : > { %v3216_v45 = vsel %vm3215_vm9, %v4125_v32, %v3212_v18 }
 0x2eb   : > { %v4131_v42 = vpop.eup %4130  ;;  %v3221_v38 = vsel %vm3218_vm10, %v3220_v36, %v3216_v45  ;;  %4132 = vrcp.f32 %v2772_v15  ;;  %v3249_v35 = vand.u32 2147483648, %v2772_v15  ;;  %v3247_v37 = vand.u32 2147483647, %v2772_v15 }
 0x2ec   : > { %v3282_v33 = vmul.f32 %v3221_v38, %v5703_v54  ;;  %v3224_v58 = vmul.f32 %v4131_v42, %v2771_v51  ;;  %vm3229_vm11 = vweird.f32 %v4131_v42  ;;  %vm3243_vm1 = vweird.f32 %v2772_v15 }
 0x2ed   : > { %vm3230_vm13 = vmor %vm3228_vm12, %vm3229_vm11  ;;  %v3250_v1 = vor.u32 1.1754944e-38, %v3249_v35  ;;  %vm3248_vm3 = vcmp.eq.f32.partialorder %v3247_v37, 8.507059e+37 }
 0x2ee   : > { %3314 = vst [vmem:[%s5263_s10 + $0xe8] sm:$0xff] %v3282_v33  ;;  %v3225_v8 = vsub.f32 1.0, %v3224_v58 }
 0x2f0   : > { %v3226_v34 = vmul.f32 %v4131_v42, %v3225_v8 }
 0x2f1   : > { %v4133_v47 = vpop.eup %4132 }
 0x2f2   : > { %v3227_v21 = vadd.f32 %v4131_v42, %v3226_v34  ;;  %v3239_v16 = vmul.f32 %v4133_v47, %v2772_v15  ;;  %vm3244_vm15 = vweird.f32 %v4133_v47 }
 0x2f3   : > { %vm3245_vm2 = vmor %vm3243_vm1, %vm3244_vm15 }
 0x2f4   : > { %v3231_v14 = vsel %vm3230_vm13, %v4131_v42, %v3227_v21  ;;  %v3240_v55 = vsub.f32 1.0, %v3239_v16 }
 0x2f5   : > { %v3236_v54 = vsel %vm3233_vm14, %v3235_v27, %v3231_v14 }
 0x2f6   : > { %v3283_v46 = vmul.f32 %v3236_v54, %v5712_v29  ;;  %v3241_v44 = vmul.f32 %v4133_v47, %v3240_v55 }
 0x2f8   : > { %3315 = vst [vmem:[%s5263_s10 + $0xf0] sm:$0xff] %v3283_v46  ;;  %v3242_v59 = vadd.f32 %v4133_v47, %v3241_v44 }
 0x2fa   : > { %v3246_v19 = vsel %vm3245_vm2, %v4133_v47, %v3242_v59 }
 0x2fb   : > { %v3251_v29 = vsel %vm3248_vm3, %v3250_v1, %v3246_v19 }
 0x2fc   : > { %v3284_v26 = vmul.f32 %v3251_v29, %v5717_v20 }
 0x2fe   : > { %3316 = vst [vmem:[%s5263_s10 + $0xf8] sm:$0xff] %v3284_v26 }
 0x2ff   : > { %4162 = shalt.err (!%p4159_p3)
}
 0x300   : > { %s4199_s7 = smov 128   ;;  %s4200_s8 = smov 8  }
 0x301   : > { %3964 = dma.vmem_to_hbm [thread:$0]  (%p4259_p5), %s3331_s16, 4096, %s3333_s25, %s3318_s26, %s4199_s7, %s4199_s7, %s4200_s8  }
 0x302 PF: > { %p3970_p4 = scmp.ge.s32.totalorder %s4197_s15, 2  ;;  %s3347_s10 = sand.u32 1, %s4185_s12  }
 0x303   : > { %s3348_s9 = scalar_lea.sflag [#allocation3], %s3347_s10 }
 0x304   : > { %p3967_p7 = pnand %p3970_p4, %p4263_p6 }
 0x306   : > { %p3968_p8 = pneg %p3967_p7 }
 0x308   : > { %4180 = dma.done.wait (%p3968_p8), %s3348_s9, 4096  }
 0x309   : > { %4182 = vsyncadd (%p3968_p8), %s3348_s9, 4294963200  ;;  %p13_p9 = scmp.ge.s32.totalorder %s4246_s18, 4   ;;  %s5855_s12 = smov %s4189_s13 }
 0x30a   : > { %s5856_s13 = smov %s4193_s14  ;;  %s5857_s14 = smov %s4257_s21 }
 0x30b   : > { %s5858_s15 = smov %s4246_s18  ;;  %15 = sbr.rel (!%p13_p9) target bundleno = 3 (0x3), region = 77 }
 0x310   :  { %3354 = vsyncpa [#allocation3], 1 }
 0x311   :  { %3356 = vsyncpa [#allocation3 + $0x1], 1 }

</bundles_post_ra>
